<compile_context>
chip_gen: v5e
topology: v5e:2x2
jax: 0.10.0
libtpu: 0.0.40
codegen_flags: <defaults>
</compile_context>

<pallas_src>
import functools

import jax
import jax.numpy as jnp
from jax.experimental import pallas as pl
from jax.experimental.pallas import tpu as pltpu

_EPS = 1e-5
_NEG_SLOPE = 0.2
_VMEM_LIMIT = 48 * 1024 * 1024   # raise scoped VMEM above 16/32 MiB defaults, < v7x 64 MiB
_M_TILE_TARGET = 512             # ~85% of HBM roofline per measured tile sweep


def _choose_tile(dim, target, align):
    """Largest divisor of `dim` that is a multiple of `align` and <= target.

    Falls back to the full extent (a full-extent block is always legal)."""
    if dim <= target:
        return dim
    t = (target // align) * align
    while t >= align:
        if dim % t == 0:
            return t
        t -= align
    return dim


# ----------------------------------------------------------------------------
# Pallas kernels
# ----------------------------------------------------------------------------
def _gemm_bias_lrelu_kernel(p_ref, w_ref, b_ref, o_ref):
    """bf16 GEMM (fp32 accum) + bias + LeakyReLU(0.2), per-tile epilogue."""
    y = jnp.dot(p_ref[0], w_ref[...], preferred_element_type=jnp.float32)
    y = y + b_ref[...]
    y = jnp.where(y >= 0.0, y, _NEG_SLOPE * y)
    o_ref[0] = y.astype(o_ref.dtype)


def _gemm_in_lrelu_kernel(p_ref, w_ref, o_ref, y_acc, *, n_mt):
    """bf16 GEMM (fp32 accum) + InstanceNorm(affine=False) + LeakyReLU(0.2).

    Conv bias intentionally omitted: a per-channel constant added before the
    InstanceNorm mean subtraction cancels exactly.  The M axis may be tiled;
    the un-normalized fp32 result is staged in a full-M VMEM scratch and the
    one-pass-stat normalization (var = E[y^2] - E[y]^2) + LeakyReLU runs on
    the last M step only.
    """
    m = pl.program_id(1)
    tm = p_ref.shape[1]
    y = jnp.dot(p_ref[0], w_ref[...], preferred_element_type=jnp.float32)
    if n_mt == 1:
        y_acc[...] = y
    else:
        start = pl.multiple_of(m * tm, tm)
        y_acc[pl.ds(start, tm), :] = y

    @pl.when(m == n_mt - 1)
    def _():
        yf = y_acc[...]
        mean = jnp.mean(yf, axis=0, keepdims=True)
        msq = jnp.mean(yf * yf, axis=0, keepdims=True)
        var = jnp.maximum(msq - mean * mean, 0.0)
        out = (yf - mean) * jax.lax.rsqrt(var + _EPS)
        out = jnp.where(out >= 0.0, out, _NEG_SLOPE * out)
        o_ref[0] = out.astype(o_ref.dtype)


def _final_gemm_kernel(wt_ref, pt_ref, b_ref, o_ref):
    """Final conv (Cout=1), computed transposed so stores are lane-dense."""
    y = jnp.dot(wt_ref[...], pt_ref[...], preferred_element_type=jnp.float32)
    o_ref[...] = (y + b_ref[...]).astype(o_ref.dtype)


# ----------------------------------------------------------------------------
# Plain-JAX glue: im2col patch extraction (cross-correlation, like nn.Conv2d)
# ----------------------------------------------------------------------------
def im2col(x_nhwc, k, stride, pad):
    x = jnp.pad(x_nhwc, ((0, 0), (pad, pad), (pad, pad), (0, 0)))
    B, Hp, Wp, C = x.shape
    Ho = (Hp - k) // stride + 1
    Wo = (Wp - k) // stride + 1
    cols = []
    for di in range(k):
        for dj in range(k):
            cols.append(x[:, di:di + stride * Ho:stride, dj:dj + stride * Wo:stride, :])
    # patch ordering: (kh, kw, cin) -- matches weight reshape below
    patches = jnp.stack(cols, axis=3)                    # (B, Ho, Wo, k*k, C)
    patches = patches.reshape(B, Ho * Wo, k * k * C)     # (B, M, K), bf16
    return patches, Ho, Wo


# ----------------------------------------------------------------------------
# Layer wrappers
# ----------------------------------------------------------------------------
def conv_in_lrelu_layer(x_nhwc, w_gemm, bias, *, stride, use_norm):
    """Conv(k4, pad1) [+ InstanceNorm] + LeakyReLU(0.2); bf16 in / bf16 out."""
    patches, Ho, Wo = im2col(x_nhwc, 4, stride, 1)       # bf16 patches
    B, M, K = patches.shape
    N = w_gemm.shape[1]
    tm = _choose_tile(M, _M_TILE_TARGET, 8)
    n_mt = M // tm

    if use_norm:
        out = pl.pallas_call(
            functools.partial(_gemm_in_lrelu_kernel, n_mt=n_mt),
            out_shape=jax.ShapeDtypeStruct((B, M, N), jnp.bfloat16),
            grid=(B, n_mt),
            in_specs=[
                pl.BlockSpec((1, tm, K), lambda b, m: (b, m, 0)),
                pl.BlockSpec((K, N), lambda b, m: (0, 0)),
            ],
            # full-M output block resident across the (arbitrary) M axis,
            # written once on the last M step
            out_specs=pl.BlockSpec((1, M, N), lambda b, m: (b, 0, 0)),
            scratch_shapes=[pltpu.VMEM((M, N), jnp.float32)],
            compiler_params=pltpu.CompilerParams(
                dimension_semantics=("parallel", "arbitrary"),
                vmem_limit_bytes=_VMEM_LIMIT),
        )(patches, w_gemm)
    else:
        out = pl.pallas_call(
            _gemm_bias_lrelu_kernel,
            out_shape=jax.ShapeDtypeStruct((B, M, N), jnp.bfloat16),
            grid=(B, n_mt),
            in_specs=[
                pl.BlockSpec((1, tm, K), lambda b, m: (b, m, 0)),
                pl.BlockSpec((K, N), lambda b, m: (0, 0)),
                pl.BlockSpec((1, N), lambda b, m: (0, 0)),
            ],
            out_specs=pl.BlockSpec((1, tm, N), lambda b, m: (b, m, 0)),
            compiler_params=pltpu.CompilerParams(
                dimension_semantics=("parallel", "parallel"),
                vmem_limit_bytes=_VMEM_LIMIT),
        )(patches, w_gemm, bias.reshape(1, N).astype(jnp.float32))

    return out.reshape(B, Ho, Wo, N)


def final_conv_layer(x_nhwc, w_gemm, bias):
    """Final Conv(k4, s1, p1, Cout=1) + flatten, lane-dense transposed GEMM."""
    patches, Ho, Wo = im2col(x_nhwc, 4, 1, 1)            # (B, M, K) bf16
    B, M, K = patches.shape
    BM = B * M
    # transposed patches (K, B*M): output last dim is spatial -> lane-dense
    pt = jnp.transpose(patches, (2, 0, 1)).reshape(K, BM)
    wt = w_gemm.T                                        # (1, K) bf16
    tl = _choose_tile(BM, 2048, 128)
    n_lt = BM // tl

    out = pl.pallas_call(
        _final_gemm_kernel,
        out_shape=jax.ShapeDtypeStruct((1, BM), jnp.float32),
        grid=(n_lt,),
        in_specs=[
            pl.BlockSpec((1, K), lambda j: (0, 0)),
            pl.BlockSpec((K, tl), lambda j: (0, j)),
            pl.BlockSpec((1, 1), lambda j: (0, 0)),
        ],
        out_specs=pl.BlockSpec((1, tl), lambda j: (0, j)),
        compiler_params=pltpu.CompilerParams(
            dimension_semantics=("parallel",),
            vmem_limit_bytes=_VMEM_LIMIT),
    )(wt, pt, bias.reshape(1, 1).astype(jnp.float32))

    # (1, B*M) b-major -> (B, Ho*Wo); matches out.view(B, -1) with Cout=1
    return out.reshape(B, M)


# ----------------------------------------------------------------------------
# Discriminator params + forward
# ----------------------------------------------------------------------------
def make_discriminator_params(key, in_channels=1, out_channels=64, num_layers=3):
    """Deterministic synthetic weights stored as bf16 GEMM matrices (KH*KW*Cin, Cout)."""
    cfgs = []
    in_f, out_f = 1, 2
    cfgs.append(dict(cin=in_channels, cout=out_channels, stride=2, norm=False, relu=True))
    for _ in range(1, num_layers):
        cfgs.append(dict(cin=out_channels * in_f, cout=out_channels * out_f,
                         stride=2, norm=True, relu=True))
        in_f = out_f
        out_f *= 2
    out_f = min(2 ** num_layers, 8)
    cfgs.append(dict(cin=out_channels * in_f, cout=out_channels * out_f,
                     stride=1, norm=True, relu=True))
    cfgs.append(dict(cin=out_channels * out_f, cout=1, stride=1, norm=False, relu=False))

    params = []
    for cfg in cfgs:
        key, kw, kb = jax.random.split(key, 3)
        w = 0.02 * jax.random.normal(kw, (4, 4, cfg["cin"], cfg["cout"]), jnp.float32)
        b = 0.01 * jax.random.normal(kb, (cfg["cout"],), jnp.float32)
        params.append(dict(
            w=w.reshape(4 * 4 * cfg["cin"], cfg["cout"]).astype(jnp.bfloat16),
            b=b,  # biases of norm layers are mathematically no-ops and never used
            **cfg))
    return params


def discriminator_forward(x_nchw, params):
    # NCHW (PyTorch convention) -> NHWC bf16 for the kernels
    x = jnp.transpose(x_nchw, (0, 2, 3, 1)).astype(jnp.bfloat16)
    for p in params[:-1]:
        x = conv_in_lrelu_layer(x, p["w"], p["b"],
                                stride=p["stride"], use_norm=p["norm"])
    p = params[-1]
    return final_conv_layer(x, p["w"], p["b"])   # (B, Ho*Wo), float32


if __name__ == "__main__":
    key = jax.random.PRNGKey(0)
    k_params, k_x = jax.random.split(key)

    # Small but architecture-consistent sizes: base filters = 8 instead of 64.
    params = make_discriminator_params(k_params, in_channels=1, out_channels=8,
                                       num_layers=3)
    x = jax.random.normal(k_x, (2, 1, 32, 32), jnp.float32)  # NCHW input

    fwd = jax.jit(lambda inp: discriminator_forward(inp, params))
    out = fwd(x)
    jax.block_until_ready(out)

    # 32 -> 16 -> 8 -> 4 -> 3 -> 2 spatially, 1 output channel -> (2, 4)
    assert out.shape == (2, 4), out.shape
    assert out.dtype == jnp.float32
    print("KERNEL_OK")
</pallas_src>

<mosaic_0001>
module attributes {stable_mosaic.version = 11 : i64} {
  func.func @_gemm_bias_lrelu_kernel(%arg0: i32, %arg1: i32, %arg2: memref<1x256x16xbf16, #tpu.memory_space<vmem>>, %arg3: memref<16x8xbf16, #tpu.memory_space<vmem>>, %arg4: memref<1x8xf32, #tpu.memory_space<vmem>>, %arg5: memref<1x256x8xbf16, #tpu.memory_space<vmem>>) attributes {dimension_semantics = [#tpu.dimension_semantics<parallel>, #tpu.dimension_semantics<parallel>], iteration_bounds = array<i64: 2, 1>, scalar_prefetch = 0 : i64, scratch_operands = 0 : i64, tpu.core_type = #tpu.core_type<tc>, window_params = [{transform_indices = @transform_0, window_bounds = array<i64: 1, 256, 16>}, {pipeline_mode = #tpu.pipeline_mode<synchronous>, transform_indices = @transform_1, window_bounds = array<i64: 16, 8>}, {pipeline_mode = #tpu.pipeline_mode<synchronous>, transform_indices = @transform_2, window_bounds = array<i64: 1, 8>}, {transform_indices = @transform_3, window_bounds = array<i64: 1, 256, 8>}]} {
    %c0 = arith.constant 0 : index
    %c0_0 = arith.constant 0 : index
    %c0_1 = arith.constant 0 : index
    %0 = vector.load %arg2[%c0, %c0_0, %c0_1] : memref<1x256x16xbf16, #tpu.memory_space<vmem>>, vector<1x256x16xbf16>
    %1 = vector.shape_cast %0 : vector<1x256x16xbf16> to vector<256x16xbf16>
    %c0_2 = arith.constant 0 : index
    %c0_3 = arith.constant 0 : index
    %2 = vector.load %arg3[%c0_2, %c0_3] : memref<16x8xbf16, #tpu.memory_space<vmem>>, vector<16x8xbf16>
    %cst = arith.constant dense<0.000000e+00> : vector<256x8xf32>
    %3 = tpu.matmul %1, %2, %cst {dimension_numbers = #tpu.dot_dimension_numbers<[1], [0], [0], [1], [0, 0, 1, 1], [], []>} : vector<256x16xbf16>, vector<16x8xbf16>, vector<256x8xf32> -> vector<256x8xf32>
    %c0_4 = arith.constant 0 : index
    %c0_5 = arith.constant 0 : index
    %4 = vector.load %arg4[%c0_4, %c0_5] : memref<1x8xf32, #tpu.memory_space<vmem>>, vector<1x8xf32>
    %5 = vector.broadcast %4 : vector<1x8xf32> to vector<256x8xf32>
    %6 = arith.addf %3, %5 : vector<256x8xf32>
    %cst_6 = arith.constant 0.000000e+00 : f32
    %7 = vector.broadcast %cst_6 : f32 to vector<256x8xf32>
    %8 = arith.cmpf oge, %6, %7 : vector<256x8xf32>
    %cst_7 = arith.constant 2.000000e-01 : f32
    %9 = vector.broadcast %cst_7 : f32 to vector<256x8xf32>
    %10 = arith.mulf %9, %6 : vector<256x8xf32>
    %11 = arith.select %8, %6, %10 : vector<256x8xi1>, vector<256x8xf32>
    %12 = arith.truncf %11 : vector<256x8xf32> to vector<256x8xbf16>
    %c0_8 = arith.constant 0 : index
    %c0_9 = arith.constant 0 : index
    %c0_10 = arith.constant 0 : index
    %13 = vector.load %arg5[%c0_8, %c0_9, %c0_10] : memref<1x256x8xbf16, #tpu.memory_space<vmem>>, vector<1x256x8xbf16>
    %14 = vector.shape_cast %13 : vector<1x256x8xbf16> to vector<256x8xbf16>
    %15 = vector.shape_cast %12 : vector<256x8xbf16> to vector<1x256x8xbf16>
    tpu.vector_store %arg5[%c0_8, %c0_9, %c0_10], %15 {strides = array<i32>} : memref<1x256x8xbf16, #tpu.memory_space<vmem>>, vector<1x256x8xbf16>,
    return
  }
  func.func @transform_0(%arg0: i32, %arg1: i32) -> (i32, i32, i32) {
    %c0_i32 = arith.constant 0 : i32
    %c0_i32_0 = arith.constant 0 : i32
    return %arg0, %arg1, %c0_i32 : i32, i32, i32
  }
  func.func @transform_1(%arg0: i32, %arg1: i32) -> (i32, i32) {
    %c0_i32 = arith.constant 0 : i32
    %c0_i32_0 = arith.constant 0 : i32
    %c0_i32_1 = arith.constant 0 : i32
    return %c0_i32, %c0_i32_0 : i32, i32
  }
  func.func @transform_2(%arg0: i32, %arg1: i32) -> (i32, i32) {
    %c0_i32 = arith.constant 0 : i32
    %c0_i32_0 = arith.constant 0 : i32
    %c0_i32_1 = arith.constant 0 : i32
    return %c0_i32, %c0_i32_0 : i32, i32
  }
  func.func @transform_3(%arg0: i32, %arg1: i32) -> (i32, i32, i32) {
    %c0_i32 = arith.constant 0 : i32
    %c0_i32_0 = arith.constant 0 : i32
    return %arg0, %arg1, %c0_i32 : i32, i32, i32
  }
}

module attributes {stable_mosaic.version = 11 : i64} {
  func.func @_gemm_in_lrelu_kernel(%arg0: i32, %arg1: i32, %arg2: memref<1x64x128xbf16, #tpu.memory_space<vmem>>, %arg3: memref<128x16xbf16, #tpu.memory_space<vmem>>, %arg4: memref<1x64x16xbf16, #tpu.memory_space<vmem>>, %arg5: memref<64x16xf32, #tpu.memory_space<vmem>>) attributes {dimension_semantics = [#tpu.dimension_semantics<parallel>, #tpu.dimension_semantics<arbitrary>], iteration_bounds = array<i64: 2, 1>, scalar_prefetch = 0 : i64, scratch_operands = 1 : i64, tpu.core_type = #tpu.core_type<tc>, window_params = [{transform_indices = @transform_0, window_bounds = array<i64: 1, 64, 128>}, {pipeline_mode = #tpu.pipeline_mode<synchronous>, transform_indices = @transform_1, window_bounds = array<i64: 128, 16>}, {transform_indices = @transform_2, window_bounds = array<i64: 1, 64, 16>}]} {
    %c0 = arith.constant 0 : index
    %c0_0 = arith.constant 0 : index
    %c0_1 = arith.constant 0 : index
    %0 = vector.load %arg2[%c0, %c0_0, %c0_1] : memref<1x64x128xbf16, #tpu.memory_space<vmem>>, vector<1x64x128xbf16>
    %1 = vector.shape_cast %0 : vector<1x64x128xbf16> to vector<64x128xbf16>
    %c0_2 = arith.constant 0 : index
    %c0_3 = arith.constant 0 : index
    %2 = vector.load %arg3[%c0_2, %c0_3] : memref<128x16xbf16, #tpu.memory_space<vmem>>, vector<128x16xbf16>
    %cst = arith.constant dense<0.000000e+00> : vector<64x16xf32>
    %3 = tpu.matmul %1, %2, %cst {dimension_numbers = #tpu.dot_dimension_numbers<[1], [0], [0], [1], [0, 0, 1, 1], [], []>} : vector<64x128xbf16>, vector<128x16xbf16>, vector<64x16xf32> -> vector<64x16xf32>
    %c0_4 = arith.constant 0 : index
    %c0_5 = arith.constant 0 : index
    %4 = vector.load %arg5[%c0_4, %c0_5] : memref<64x16xf32, #tpu.memory_space<vmem>>, vector<64x16xf32>
    tpu.vector_store %arg5[%c0_4, %c0_5], %3 {strides = array<i32>} : memref<64x16xf32, #tpu.memory_space<vmem>>, vector<64x16xf32>,
    %c0_i32 = arith.constant 0 : i32
    %5 = arith.cmpi eq, %arg1, %c0_i32 : i32
    %6 = arith.extui %5 : i1 to i32
    %c0_i32_6 = arith.constant 0 : i32
    %7 = arith.cmpi ne, %6, %c0_i32_6 : i32
    scf.if %7 {
      %c0_7 = arith.constant 0 : index
      %c0_8 = arith.constant 0 : index
      %8 = vector.load %arg5[%c0_7, %c0_8] : memref<64x16xf32, #tpu.memory_space<vmem>>, vector<64x16xf32>
      %cst_9 = arith.constant dense<0.000000e+00> : vector<16xf32>
      %9 = vector.multi_reduction <add>, %8, %cst_9 [0] : vector<64x16xf32> to vector<16xf32>
      %10 = vector.shape_cast %9 : vector<16xf32> to vector<1x16xf32>
      %cst_10 = arith.constant 6.400000e+01 : f32
      %11 = vector.broadcast %cst_10 : f32 to vector<1x16xf32>
      %12 = arith.divf %10, %11 : vector<1x16xf32>
      %13 = arith.mulf %8, %8 : vector<64x16xf32>
      %cst_11 = arith.constant dense<0.000000e+00> : vector<16xf32>
      %14 = vector.multi_reduction <add>, %13, %cst_11 [0] : vector<64x16xf32> to vector<16xf32>
      %15 = vector.shape_cast %14 : vector<16xf32> to vector<1x16xf32>
      %cst_12 = arith.constant 6.400000e+01 : f32
      %16 = vector.broadcast %cst_12 : f32 to vector<1x16xf32>
      %17 = arith.divf %15, %16 : vector<1x16xf32>
      %18 = arith.mulf %12, %12 : vector<1x16xf32>
      %19 = arith.subf %17, %18 : vector<1x16xf32>
      %cst_13 = arith.constant 0.000000e+00 : f32
      %20 = vector.broadcast %cst_13 : f32 to vector<1x16xf32>
      %21 = arith.maximumf %19, %20 : vector<1x16xf32>
      %22 = vector.broadcast %12 : vector<1x16xf32> to vector<64x16xf32>
      %23 = arith.subf %8, %22 : vector<64x16xf32>
      %cst_14 = arith.constant 9.99999974E-6 : f32
      %24 = vector.broadcast %cst_14 : f32 to vector<1x16xf32>
      %25 = arith.addf %21, %24 : vector<1x16xf32>
      %26 = math.rsqrt %25 : vector<1x16xf32>
      %27 = vector.broadcast %26 : vector<1x16xf32> to vector<64x16xf32>
      %28 = arith.mulf %23, %27 : vector<64x16xf32>
      %cst_15 = arith.constant 0.000000e+00 : f32
      %29 = vector.broadcast %cst_15 : f32 to vector<64x16xf32>
      %30 = arith.cmpf oge, %28, %29 : vector<64x16xf32>
      %cst_16 = arith.constant 2.000000e-01 : f32
      %31 = vector.broadcast %cst_16 : f32 to vector<64x16xf32>
      %32 = arith.mulf %31, %28 : vector<64x16xf32>
      %33 = arith.select %30, %28, %32 : vector<64x16xi1>, vector<64x16xf32>
      %34 = arith.truncf %33 : vector<64x16xf32> to vector<64x16xbf16>
      %c0_17 = arith.constant 0 : index
      %c0_18 = arith.constant 0 : index
      %c0_19 = arith.constant 0 : index
      %35 = vector.load %arg4[%c0_17, %c0_18, %c0_19] : memref<1x64x16xbf16, #tpu.memory_space<vmem>>, vector<1x64x16xbf16>
      %36 = vector.shape_cast %35 : vector<1x64x16xbf16> to vector<64x16xbf16>
      %37 = vector.shape_cast %34 : vector<64x16xbf16> to vector<1x64x16xbf16>
      tpu.vector_store %arg4[%c0_17, %c0_18, %c0_19], %37 {strides = array<i32>} : memref<1x64x16xbf16, #tpu.memory_space<vmem>>, vector<1x64x16xbf16>,
    } else {
    }
    return
  }
  func.func @transform_0(%arg0: i32, %arg1: i32) -> (i32, i32, i32) {
    %c0_i32 = arith.constant 0 : i32
    %c0_i32_0 = arith.constant 0 : i32
    return %arg0, %arg1, %c0_i32 : i32, i32, i32
  }
  func.func @transform_1(%arg0: i32, %arg1: i32) -> (i32, i32) {
    %c0_i32 = arith.constant 0 : i32
    %c0_i32_0 = arith.constant 0 : i32
    %c0_i32_1 = arith.constant 0 : i32
    return %c0_i32, %c0_i32_0 : i32, i32
  }
  func.func @transform_2(%arg0: i32, %arg1: i32) -> (i32, i32, i32) {
    %c0_i32 = arith.constant 0 : i32
    %c0_i32_0 = arith.constant 0 : i32
    %c0_i32_1 = arith.constant 0 : i32
    return %arg0, %c0_i32, %c0_i32_0 : i32, i32, i32
  }
}

module attributes {stable_mosaic.version = 11 : i64} {
  func.func @_gemm_in_lrelu_kernel(%arg0: i32, %arg1: i32, %arg2: memref<1x16x256xbf16, #tpu.memory_space<vmem>>, %arg3: memref<256x32xbf16, #tpu.memory_space<vmem>>, %arg4: memref<1x16x32xbf16, #tpu.memory_space<vmem>>, %arg5: memref<16x32xf32, #tpu.memory_space<vmem>>) attributes {dimension_semantics = [#tpu.dimension_semantics<parallel>, #tpu.dimension_semantics<arbitrary>], iteration_bounds = array<i64: 2, 1>, scalar_prefetch = 0 : i64, scratch_operands = 1 : i64, tpu.core_type = #tpu.core_type<tc>, window_params = [{transform_indices = @transform_0, window_bounds = array<i64: 1, 16, 256>}, {pipeline_mode = #tpu.pipeline_mode<synchronous>, transform_indices = @transform_1, window_bounds = array<i64: 256, 32>}, {transform_indices = @transform_2, window_bounds = array<i64: 1, 16, 32>}]} {
    %c0 = arith.constant 0 : index
    %c0_0 = arith.constant 0 : index
    %c0_1 = arith.constant 0 : index
    %0 = vector.load %arg2[%c0, %c0_0, %c0_1] : memref<1x16x256xbf16, #tpu.memory_space<vmem>>, vector<1x16x256xbf16>
    %1 = vector.shape_cast %0 : vector<1x16x256xbf16> to vector<16x256xbf16>
    %c0_2 = arith.constant 0 : index
    %c0_3 = arith.constant 0 : index
    %2 = vector.load %arg3[%c0_2, %c0_3] : memref<256x32xbf16, #tpu.memory_space<vmem>>, vector<256x32xbf16>
    %cst = arith.constant dense<0.000000e+00> : vector<16x32xf32>
    %3 = tpu.matmul %1, %2, %cst {dimension_numbers = #tpu.dot_dimension_numbers<[1], [0], [0], [1], [0, 0, 1, 1], [], []>} : vector<16x256xbf16>, vector<256x32xbf16>, vector<16x32xf32> -> vector<16x32xf32>
    %c0_4 = arith.constant 0 : index
    %c0_5 = arith.constant 0 : index
    %4 = vector.load %arg5[%c0_4, %c0_5] : memref<16x32xf32, #tpu.memory_space<vmem>>, vector<16x32xf32>
    tpu.vector_store %arg5[%c0_4, %c0_5], %3 {strides = array<i32>} : memref<16x32xf32, #tpu.memory_space<vmem>>, vector<16x32xf32>,
    %c0_i32 = arith.constant 0 : i32
    %5 = arith.cmpi eq, %arg1, %c0_i32 : i32
    %6 = arith.extui %5 : i1 to i32
    %c0_i32_6 = arith.constant 0 : i32
    %7 = arith.cmpi ne, %6, %c0_i32_6 : i32
    scf.if %7 {
      %c0_7 = arith.constant 0 : index
      %c0_8 = arith.constant 0 : index
      %8 = vector.load %arg5[%c0_7, %c0_8] : memref<16x32xf32, #tpu.memory_space<vmem>>, vector<16x32xf32>
      %cst_9 = arith.constant dense<0.000000e+00> : vector<32xf32>
      %9 = vector.multi_reduction <add>, %8, %cst_9 [0] : vector<16x32xf32> to vector<32xf32>
      %10 = vector.shape_cast %9 : vector<32xf32> to vector<1x32xf32>
      %cst_10 = arith.constant 1.600000e+01 : f32
      %11 = vector.broadcast %cst_10 : f32 to vector<1x32xf32>
      %12 = arith.divf %10, %11 : vector<1x32xf32>
      %13 = arith.mulf %8, %8 : vector<16x32xf32>
      %cst_11 = arith.constant dense<0.000000e+00> : vector<32xf32>
      %14 = vector.multi_reduction <add>, %13, %cst_11 [0] : vector<16x32xf32> to vector<32xf32>
      %15 = vector.shape_cast %14 : vector<32xf32> to vector<1x32xf32>
      %cst_12 = arith.constant 1.600000e+01 : f32
      %16 = vector.broadcast %cst_12 : f32 to vector<1x32xf32>
      %17 = arith.divf %15, %16 : vector<1x32xf32>
      %18 = arith.mulf %12, %12 : vector<1x32xf32>
      %19 = arith.subf %17, %18 : vector<1x32xf32>
      %cst_13 = arith.constant 0.000000e+00 : f32
      %20 = vector.broadcast %cst_13 : f32 to vector<1x32xf32>
      %21 = arith.maximumf %19, %20 : vector<1x32xf32>
      %22 = vector.broadcast %12 : vector<1x32xf32> to vector<16x32xf32>
      %23 = arith.subf %8, %22 : vector<16x32xf32>
      %cst_14 = arith.constant 9.99999974E-6 : f32
      %24 = vector.broadcast %cst_14 : f32 to vector<1x32xf32>
      %25 = arith.addf %21, %24 : vector<1x32xf32>
      %26 = math.rsqrt %25 : vector<1x32xf32>
      %27 = vector.broadcast %26 : vector<1x32xf32> to vector<16x32xf32>
      %28 = arith.mulf %23, %27 : vector<16x32xf32>
      %cst_15 = arith.constant 0.000000e+00 : f32
      %29 = vector.broadcast %cst_15 : f32 to vector<16x32xf32>
      %30 = arith.cmpf oge, %28, %29 : vector<16x32xf32>
      %cst_16 = arith.constant 2.000000e-01 : f32
      %31 = vector.broadcast %cst_16 : f32 to vector<16x32xf32>
      %32 = arith.mulf %31, %28 : vector<16x32xf32>
      %33 = arith.select %30, %28, %32 : vector<16x32xi1>, vector<16x32xf32>
      %34 = arith.truncf %33 : vector<16x32xf32> to vector<16x32xbf16>
      %c0_17 = arith.constant 0 : index
      %c0_18 = arith.constant 0 : index
      %c0_19 = arith.constant 0 : index
      %35 = vector.load %arg4[%c0_17, %c0_18, %c0_19] : memref<1x16x32xbf16, #tpu.memory_space<vmem>>, vector<1x16x32xbf16>
      %36 = vector.shape_cast %35 : vector<1x16x32xbf16> to vector<16x32xbf16>
      %37 = vector.shape_cast %34 : vector<16x32xbf16> to vector<1x16x32xbf16>
      tpu.vector_store %arg4[%c0_17, %c0_18, %c0_19], %37 {strides = array<i32>} : memref<1x16x32xbf16, #tpu.memory_space<vmem>>, vector<1x16x32xbf16>,
    } else {
    }
    return
  }
  func.func @transform_0(%arg0: i32, %arg1: i32) -> (i32, i32, i32) {
    %c0_i32 = arith.constant 0 : i32
    %c0_i32_0 = arith.constant 0 : i32
    return %arg0, %arg1, %c0_i32 : i32, i32, i32
  }
  func.func @transform_1(%arg0: i32, %arg1: i32) -> (i32, i32) {
    %c0_i32 = arith.constant 0 : i32
    %c0_i32_0 = arith.constant 0 : i32
    %c0_i32_1 = arith.constant 0 : i32
    return %c0_i32, %c0_i32_0 : i32, i32
  }
  func.func @transform_2(%arg0: i32, %arg1: i32) -> (i32, i32, i32) {
    %c0_i32 = arith.constant 0 : i32
    %c0_i32_0 = arith.constant 0 : i32
    %c0_i32_1 = arith.constant 0 : i32
    return %arg0, %c0_i32, %c0_i32_0 : i32, i32, i32
  }
}

module attributes {stable_mosaic.version = 11 : i64} {
  func.func @_gemm_in_lrelu_kernel(%arg0: i32, %arg1: i32, %arg2: memref<1x9x512xbf16, #tpu.memory_space<vmem>>, %arg3: memref<512x64xbf16, #tpu.memory_space<vmem>>, %arg4: memref<1x9x64xbf16, #tpu.memory_space<vmem>>, %arg5: memref<9x64xf32, #tpu.memory_space<vmem>>) attributes {dimension_semantics = [#tpu.dimension_semantics<parallel>, #tpu.dimension_semantics<arbitrary>], iteration_bounds = array<i64: 2, 1>, scalar_prefetch = 0 : i64, scratch_operands = 1 : i64, tpu.core_type = #tpu.core_type<tc>, window_params = [{transform_indices = @transform_0, window_bounds = array<i64: 1, 9, 512>}, {pipeline_mode = #tpu.pipeline_mode<synchronous>, transform_indices = @transform_1, window_bounds = array<i64: 512, 64>}, {transform_indices = @transform_2, window_bounds = array<i64: 1, 9, 64>}]} {
    %c0 = arith.constant 0 : index
    %c0_0 = arith.constant 0 : index
    %c0_1 = arith.constant 0 : index
    %0 = vector.load %arg2[%c0, %c0_0, %c0_1] : memref<1x9x512xbf16, #tpu.memory_space<vmem>>, vector<1x9x512xbf16>
    %1 = vector.shape_cast %0 : vector<1x9x512xbf16> to vector<9x512xbf16>
    %c0_2 = arith.constant 0 : index
    %c0_3 = arith.constant 0 : index
    %2 = vector.load %arg3[%c0_2, %c0_3] : memref<512x64xbf16, #tpu.memory_space<vmem>>, vector<512x64xbf16>
    %cst = arith.constant dense<0.000000e+00> : vector<9x64xf32>
    %3 = tpu.matmul %1, %2, %cst {dimension_numbers = #tpu.dot_dimension_numbers<[1], [0], [0], [1], [0, 0, 1, 1], [], []>} : vector<9x512xbf16>, vector<512x64xbf16>, vector<9x64xf32> -> vector<9x64xf32>
    %c0_4 = arith.constant 0 : index
    %c0_5 = arith.constant 0 : index
    %4 = vector.load %arg5[%c0_4, %c0_5] : memref<9x64xf32, #tpu.memory_space<vmem>>, vector<9x64xf32>
    tpu.vector_store %arg5[%c0_4, %c0_5], %3 {strides = array<i32>} : memref<9x64xf32, #tpu.memory_space<vmem>>, vector<9x64xf32>,
    %c0_i32 = arith.constant 0 : i32
    %5 = arith.cmpi eq, %arg1, %c0_i32 : i32
    %6 = arith.extui %5 : i1 to i32
    %c0_i32_6 = arith.constant 0 : i32
    %7 = arith.cmpi ne, %6, %c0_i32_6 : i32
    scf.if %7 {
      %c0_7 = arith.constant 0 : index
      %c0_8 = arith.constant 0 : index
      %8 = vector.load %arg5[%c0_7, %c0_8] : memref<9x64xf32, #tpu.memory_space<vmem>>, vector<9x64xf32>
      %cst_9 = arith.constant dense<0.000000e+00> : vector<64xf32>
      %9 = vector.multi_reduction <add>, %8, %cst_9 [0] : vector<9x64xf32> to vector<64xf32>
      %10 = vector.shape_cast %9 : vector<64xf32> to vector<1x64xf32>
      %cst_10 = arith.constant 9.000000e+00 : f32
      %11 = vector.broadcast %cst_10 : f32 to vector<1x64xf32>
      %12 = arith.divf %10, %11 : vector<1x64xf32>
      %13 = arith.mulf %8, %8 : vector<9x64xf32>
      %cst_11 = arith.constant dense<0.000000e+00> : vector<64xf32>
      %14 = vector.multi_reduction <add>, %13, %cst_11 [0] : vector<9x64xf32> to vector<64xf32>
      %15 = vector.shape_cast %14 : vector<64xf32> to vector<1x64xf32>
      %cst_12 = arith.constant 9.000000e+00 : f32
      %16 = vector.broadcast %cst_12 : f32 to vector<1x64xf32>
      %17 = arith.divf %15, %16 : vector<1x64xf32>
      %18 = arith.mulf %12, %12 : vector<1x64xf32>
      %19 = arith.subf %17, %18 : vector<1x64xf32>
      %cst_13 = arith.constant 0.000000e+00 : f32
      %20 = vector.broadcast %cst_13 : f32 to vector<1x64xf32>
      %21 = arith.maximumf %19, %20 : vector<1x64xf32>
      %22 = vector.broadcast %12 : vector<1x64xf32> to vector<9x64xf32>
      %23 = arith.subf %8, %22 : vector<9x64xf32>
      %cst_14 = arith.constant 9.99999974E-6 : f32
      %24 = vector.broadcast %cst_14 : f32 to vector<1x64xf32>
      %25 = arith.addf %21, %24 : vector<1x64xf32>
      %26 = math.rsqrt %25 : vector<1x64xf32>
      %27 = vector.broadcast %26 : vector<1x64xf32> to vector<9x64xf32>
      %28 = arith.mulf %23, %27 : vector<9x64xf32>
      %cst_15 = arith.constant 0.000000e+00 : f32
      %29 = vector.broadcast %cst_15 : f32 to vector<9x64xf32>
      %30 = arith.cmpf oge, %28, %29 : vector<9x64xf32>
      %cst_16 = arith.constant 2.000000e-01 : f32
      %31 = vector.broadcast %cst_16 : f32 to vector<9x64xf32>
      %32 = arith.mulf %31, %28 : vector<9x64xf32>
      %33 = arith.select %30, %28, %32 : vector<9x64xi1>, vector<9x64xf32>
      %34 = arith.truncf %33 : vector<9x64xf32> to vector<9x64xbf16>
      %c0_17 = arith.constant 0 : index
      %c0_18 = arith.constant 0 : index
      %c0_19 = arith.constant 0 : index
      %35 = vector.load %arg4[%c0_17, %c0_18, %c0_19] : memref<1x9x64xbf16, #tpu.memory_space<vmem>>, vector<1x9x64xbf16>
      %36 = vector.shape_cast %35 : vector<1x9x64xbf16> to vector<9x64xbf16>
      %37 = vector.shape_cast %34 : vector<9x64xbf16> to vector<1x9x64xbf16>
      tpu.vector_store %arg4[%c0_17, %c0_18, %c0_19], %37 {strides = array<i32>} : memref<1x9x64xbf16, #tpu.memory_space<vmem>>, vector<1x9x64xbf16>,
    } else {
    }
    return
  }
  func.func @transform_0(%arg0: i32, %arg1: i32) -> (i32, i32, i32) {
    %c0_i32 = arith.constant 0 : i32
    %c0_i32_0 = arith.constant 0 : i32
    return %arg0, %arg1, %c0_i32 : i32, i32, i32
  }
  func.func @transform_1(%arg0: i32, %arg1: i32) -> (i32, i32) {
    %c0_i32 = arith.constant 0 : i32
    %c0_i32_0 = arith.constant 0 : i32
    %c0_i32_1 = arith.constant 0 : i32
    return %c0_i32, %c0_i32_0 : i32, i32
  }
  func.func @transform_2(%arg0: i32, %arg1: i32) -> (i32, i32, i32) {
    %c0_i32 = arith.constant 0 : i32
    %c0_i32_0 = arith.constant 0 : i32
    %c0_i32_1 = arith.constant 0 : i32
    return %arg0, %c0_i32, %c0_i32_0 : i32, i32, i32
  }
}

module attributes {stable_mosaic.version = 11 : i64} {
  func.func @_final_gemm_kernel(%arg0: i32, %arg1: memref<1x1024xbf16, #tpu.memory_space<vmem>>, %arg2: memref<1024x8xbf16, #tpu.memory_space<vmem>>, %arg3: memref<1x1xf32, #tpu.memory_space<vmem>>, %arg4: memref<1x8xf32, #tpu.memory_space<vmem>>) attributes {dimension_semantics = [#tpu.dimension_semantics<parallel>], iteration_bounds = array<i64: 1>, scalar_prefetch = 0 : i64, scratch_operands = 0 : i64, tpu.core_type = #tpu.core_type<tc>, window_params = [{pipeline_mode = #tpu.pipeline_mode<synchronous>, transform_indices = @transform_0, window_bounds = array<i64: 1, 1024>}, {transform_indices = @transform_1, window_bounds = array<i64: 1024, 8>}, {pipeline_mode = #tpu.pipeline_mode<synchronous>, transform_indices = @transform_2, window_bounds = array<i64: 1, 1>}, {transform_indices = @transform_3, window_bounds = array<i64: 1, 8>}]} {
    %c0 = arith.constant 0 : index
    %c0_0 = arith.constant 0 : index
    %0 = vector.load %arg1[%c0, %c0_0] : memref<1x1024xbf16, #tpu.memory_space<vmem>>, vector<1x1024xbf16>
    %c0_1 = arith.constant 0 : index
    %c0_2 = arith.constant 0 : index
    %1 = vector.load %arg2[%c0_1, %c0_2] : memref<1024x8xbf16, #tpu.memory_space<vmem>>, vector<1024x8xbf16>
    %cst = arith.constant dense<0.000000e+00> : vector<1x8xf32>
    %2 = tpu.matmul %0, %1, %cst {dimension_numbers = #tpu.dot_dimension_numbers<[1], [0], [0], [1], [0, 0, 1, 1], [], []>} : vector<1x1024xbf16>, vector<1024x8xbf16>, vector<1x8xf32> -> vector<1x8xf32>
    %c0_3 = arith.constant 0 : index
    %c0_4 = arith.constant 0 : index
    %3 = vector.load %arg3[%c0_3, %c0_4] : memref<1x1xf32, #tpu.memory_space<vmem>>, vector<1x1xf32>
    %4 = vector.broadcast %3 : vector<1x1xf32> to vector<1x8xf32>
    %5 = arith.addf %2, %4 : vector<1x8xf32>
    %c0_5 = arith.constant 0 : index
    %c0_6 = arith.constant 0 : index
    %6 = vector.load %arg4[%c0_5, %c0_6] : memref<1x8xf32, #tpu.memory_space<vmem>>, vector<1x8xf32>
    tpu.vector_store %arg4[%c0_5, %c0_6], %5 {strides = array<i32>} : memref<1x8xf32, #tpu.memory_space<vmem>>, vector<1x8xf32>,
    return
  }
  func.func @transform_0(%arg0: i32) -> (i32, i32) {
    %c0_i32 = arith.constant 0 : i32
    %c0_i32_0 = arith.constant 0 : i32
    %c0_i32_1 = arith.constant 0 : i32
    return %c0_i32, %c0_i32_0 : i32, i32
  }
  func.func @transform_1(%arg0: i32) -> (i32, i32) {
    %c0_i32 = arith.constant 0 : i32
    %c0_i32_0 = arith.constant 0 : i32
    return %c0_i32, %arg0 : i32, i32
  }
  func.func @transform_2(%arg0: i32) -> (i32, i32) {
    %c0_i32 = arith.constant 0 : i32
    %c0_i32_0 = arith.constant 0 : i32
    %c0_i32_1 = arith.constant 0 : i32
    return %c0_i32, %c0_i32_0 : i32, i32
  }
  func.func @transform_3(%arg0: i32) -> (i32, i32) {
    %c0_i32 = arith.constant 0 : i32
    %c0_i32_0 = arith.constant 0 : i32
    return %c0_i32, %arg0 : i32, i32
  }
}

</mosaic_0001>

<bundles_post_ra>
// kernel: _lambda_.5
= control target key start
LH: loop header
LB: loop body
LE: loop exit
PB: predicated region body
PF: predicated region fallthrough
CT: control target
= control target key end

     0   :  { %s907_s12 = smov 0   ;;  %s909_s13 = smov 0   ;;  %s1069_s0 = inlined_call_operand.vmem [shape: bf16[2,256,16], index: 0, kind: input, shape index: {}]   ;;  %s1070_s1 = inlined_call_operand.vmem [shape: bf16[16,8], index: 1, kind: input, shape index: {}]   ;;  %s1071_s2 = inlined_call_operand.vmem [shape: f32[1,8], index: 2, kind: input, shape index: {}]   ;;  %s1072_s3 = inlined_call_operand.vmem [shape: bf16[2,256,8], index: 3, kind: output, shape index: {}]  }
   0x1   :  { %s911_s14 = smov 0  }
   0x2 LB: > { %s25_s15 = sadd.s32 1, %s881_s13  ;;  %p725_p0 = scmp.ge.s32.totalorder %s885_s14, 1  ;;  %s885_s14 = sphi %s911_s14, %s13_s14   ;;  %s881_s13 = sphi %s909_s13, %s1074_s13   ;;  %s877_s12 = sphi %s907_s12, %s1073_s12  }
   0x3   : > { %p27_p1 = scmp.ge.s32.totalorder %s25_s15, 2  ;;  %p158_p2 = scmp.lt.s32.totalorder %s885_s14, 3 }
   0x5   : > { %s1076_s15 = smov (%p27_p1, %s25_s15), 0  ;;  %p159_p3 = pnand %p725_p0, %p158_p2 }
   0x6   : > { %p191_p4 = scmp.lt.s32.totalorder (!%p159_p3), %s877_s12, 1 }
   0x7   : > { %162 = sbr.rel (%p159_p3) target bundleno = 215 (0xd7), region = 32 }
   0xc   : > { %v834_v0 = vld [vmem:[%s1070_s1] sm:$0xff]  ;;  %s1078_s12 = smov (!%p191_p4, %s877_s12), 1  ;;  %vm335_vm0 = vcmask 130048   ;;  %vm601_vm3 = vcmask 60416  }
   0xd   : > { %391 = vmatpush.bf16.msra.mxu0 %v834_v0  ;;  %835 = vmatpush.bf16.msra.mxu1 %v834_v0  ;;  %s816_s18 = sshll.u32 %s1078_s12, 7  ;;  %v955_v17 = vld [vmem:[%s1071_s2] ss:$0 sm:$0xff] }
   0xe   : > { %836 = vmatpush.bf16.msra.mxu2 %v834_v0  ;;  %837 = vmatpush.bf16.msra.mxu3 %v834_v0  ;;  %s198_s21 = scalar_lea.vmem %s1069_s0, %s816_s18  ;;  %s964_s26 = scalar_lea.vmem %s1072_s3, %s816_s18 }
   0xf   : > { %v818_v1 = vld [vmem:[%s198_s21] sm:$0xff]  ;;  %v819_v5 = vld [vmem:[%s198_s21 + $0x8] sm:$0xff]  ;;  %v820_v9 = vld [vmem:[%s198_s21 + $0x10] sm:$0xff] }
  0x10   : > { %v822_v2 = vld [vmem:[%s198_s21 + $0x20] sm:$0xff]  ;;  %798 = vmatmul.msk.bf16.vlgmr.msra.gmra.mxu0 %vm335_vm0, %v818_v1  ;;  %v823_v6 = vld [vmem:[%s198_s21 + $0x28] sm:$0xff]  ;;  %v824_v10 = vld [vmem:[%s198_s21 + $0x30] sm:$0xff] }
  0x11   : > { %v826_v3 = vld [vmem:[%s198_s21 + $0x40] sm:$0xff]  ;;  %802 = vmatmul.msk.bf16.vlgmr.msra.gmra.mxu1 %vm335_vm0, %v822_v2  ;;  %v827_v7 = vld [vmem:[%s198_s21 + $0x48] sm:$0xff]  ;;  %v828_v11 = vld [vmem:[%s198_s21 + $0x50] sm:$0xff] }
  0x12   : > { %v830_v4 = vld [vmem:[%s198_s21 + $0x60] sm:$0xff]  ;;  %806 = vmatmul.msk.bf16.vlgmr.msra.gmra.mxu2 %vm335_vm0, %v826_v3  ;;  %v831_v8 = vld [vmem:[%s198_s21 + $0x68] sm:$0xff]  ;;  %v832_v12 = vld [vmem:[%s198_s21 + $0x70] sm:$0xff] }
  0x13   : > { %810 = vmatmul.msk.bf16.vlgmr.msra.gmra.mxu3 %vm335_vm0, %v830_v4  ;;  %v821_v13 = vld [vmem:[%s198_s21 + $0x18] sm:$0xff] }
  0x14   : > { %v825_v14 = vld [vmem:[%s198_s21 + $0x38] sm:$0xff] }
  0x15   : > { %v829_v15 = vld [vmem:[%s198_s21 + $0x58] sm:$0xff] }
  0x16   : > { %v833_v16 = vld [vmem:[%s198_s21 + $0x78] sm:$0xff] }
  0x20   : > { %799 = vmatmul.msk.bf16.gmra.mxu0 %vm335_vm0, %v819_v5 }
  0x21   : > { %803 = vmatmul.msk.bf16.gmra.mxu1 %vm335_vm0, %v823_v6 }
  0x22   : > { %807 = vmatmul.msk.bf16.gmra.mxu2 %vm335_vm0, %v827_v7 }
  0x23   : > { %811 = vmatmul.msk.bf16.gmra.mxu3 %vm335_vm0, %v831_v8 }
  0x30   : > { %800 = vmatmul.msk.bf16.gmra.mxu0 %vm335_vm0, %v820_v9 }
  0x31   : > { %804 = vmatmul.msk.bf16.gmra.mxu1 %vm335_vm0, %v824_v10 }
  0x32   : > { %808 = vmatmul.msk.bf16.gmra.mxu2 %vm335_vm0, %v828_v11 }
  0x33   : > { %812 = vmatmul.msk.bf16.gmra.mxu3 %vm335_vm0, %v832_v12 }
  0x40   : > { %801 = vmatmul.msk.bf16.gmra.mxu0 %vm335_vm0, %v821_v13 }
  0x41   : > { %805 = vmatmul.msk.bf16.gmra.mxu1 %vm335_vm0, %v825_v14 }
  0x42   : > { %809 = vmatmul.msk.bf16.gmra.mxu2 %vm335_vm0, %v829_v15 }
  0x43   : > { %813 = vmatmul.msk.bf16.gmra.mxu3 %vm335_vm0, %v833_v16 }
  0x8d   : > { %v393_v18 = vpop.f32.mrf.mxu0 }
  0x8e   : > { %v413_v19 = vpop.f32.mrf.mxu1  ;;  %v394_v20 = vadd.f32 %v955_v17, %v393_v18 }
  0x8f   : > { %v414_v21 = vadd.f32 %v955_v17, %v413_v19 }
  0x90   : > { %vm473_vm1 = vcmp.ge.f32.partialorder %v394_v20, 0.0  ;;  %v505_v22 = vmul.f32 0.2, %v394_v20 }
  0x91   : > { %vm481_vm2 = vcmp.ge.f32.partialorder %v414_v21, 0.0  ;;  %v513_v23 = vmul.f32 0.2, %v414_v21 }
  0x92   : > { %v537_v24 = vsel %vm473_vm1, %v394_v20, %v505_v22 }
  0x93   : > { %v545_v25 = vsel %vm481_vm2, %v414_v21, %v513_v23  ;;  %v569_v26 = vpack.c.bf16 %v537_v24, %v537_v24 }
  0x94   : > { %v577_v27 = vpack.c.bf16 %v545_v25, %v545_v25 }
  0x95   : > { %v433_v28 = vpop.f32.mrf.mxu2  ;;  %602 = vst.msk [vmem:[%s964_s26] sm:$0xf] %vm601_vm3, %v569_v26  ;;  %v395_v32 = vpop.f32.mrf.mxu0 }
  0x96   : > { %v453_v29 = vpop.f32.mrf.mxu3  ;;  %v434_v30 = vadd.f32 %v955_v17, %v433_v28  ;;  %v415_v33 = vpop.f32.mrf.mxu1  ;;  %610 = vst.msk [vmem:[%s964_s26 + $0x20] sm:$0xf] %vm601_vm3, %v577_v27  ;;  %v396_v34 = vadd.f32 %v955_v17, %v395_v32 }
  0x97   : > { %v454_v31 = vadd.f32 %v955_v17, %v453_v29  ;;  %v416_v35 = vadd.f32 %v955_v17, %v415_v33 }
  0x98   : > { %vm489_vm4 = vcmp.ge.f32.partialorder %v434_v30, 0.0  ;;  %v521_v36 = vmul.f32 0.2, %v434_v30  ;;  %vm474_vm6 = vcmp.ge.f32.partialorder %v396_v34, 0.0  ;;  %v506_v38 = vmul.f32 0.2, %v396_v34 }
  0x99   : > { %vm497_vm5 = vcmp.ge.f32.partialorder %v454_v31, 0.0  ;;  %v529_v37 = vmul.f32 0.2, %v454_v31  ;;  %vm482_vm7 = vcmp.ge.f32.partialorder %v416_v35, 0.0  ;;  %v514_v39 = vmul.f32 0.2, %v416_v35 }
  0x9a   : > { %v553_v40 = vsel %vm489_vm4, %v434_v30, %v521_v36  ;;  %v538_v44 = vsel %vm474_vm6, %v396_v34, %v506_v38 }
  0x9b   : > { %v561_v41 = vsel %vm497_vm5, %v454_v31, %v529_v37  ;;  %v585_v42 = vpack.c.bf16 %v553_v40, %v553_v40  ;;  %v546_v45 = vsel %vm482_vm7, %v416_v35, %v514_v39  ;;  %v570_v46 = vpack.c.bf16 %v538_v44, %v538_v44 }
  0x9c   : > { %v593_v43 = vpack.c.bf16 %v561_v41, %v561_v41  ;;  %v578_v47 = vpack.c.bf16 %v546_v45, %v546_v45 }
  0x9d   : > { %618 = vst.msk [vmem:[%s964_s26 + $0x40] sm:$0xf] %vm601_vm3, %v585_v42  ;;  %v435_v48 = vpop.f32.mrf.mxu2  ;;  %v398_v52 = vpop.f32.mrf.mxu0 }
  0x9e   : > { %v455_v49 = vpop.f32.mrf.mxu3  ;;  %626 = vst.msk [vmem:[%s964_s26 + $0x60] sm:$0xf] %vm601_vm3, %v593_v43  ;;  %v436_v50 = vadd.f32 %v955_v17, %v435_v48  ;;  %v418_v53 = vpop.f32.mrf.mxu1  ;;  %v399_v54 = vadd.f32 %v955_v17, %v398_v52 }
  0x9f   : > { %v456_v51 = vadd.f32 %v955_v17, %v455_v49  ;;  %603 = vst.msk [vmem:[%s964_s26 + $0x4] sm:$0xf] %vm601_vm3, %v570_v46  ;;  %v419_v55 = vadd.f32 %v955_v17, %v418_v53 }
  0xa0   : > { %611 = vst.msk [vmem:[%s964_s26 + $0x24] sm:$0xf] %vm601_vm3, %v578_v47  ;;  %vm490_vm8 = vcmp.ge.f32.partialorder %v436_v50, 0.0  ;;  %v522_v56 = vmul.f32 0.2, %v436_v50  ;;  %vm475_vm10 = vcmp.ge.f32.partialorder %v399_v54, 0.0 }
  0xa1   : > { %vm498_vm9 = vcmp.ge.f32.partialorder %v456_v51, 0.0  ;;  %v530_v57 = vmul.f32 0.2, %v456_v51  ;;  %v507_v58 = vmul.f32 0.2, %v399_v54  ;;  %vm483_vm11 = vcmp.ge.f32.partialorder %v419_v55, 0.0 }
  0xa2   : > { %v554_v59 = vsel %vm490_vm8, %v436_v50, %v522_v56  ;;  %v515_v60 = vmul.f32 0.2, %v419_v55 }
  0xa3   : > { %v586_v61 = vpack.c.bf16 %v554_v59, %v554_v59  ;;  %v562_v62 = vsel %vm498_vm9, %v456_v51, %v530_v57  ;;  %v539_v63 = vsel %vm475_vm10, %v399_v54, %v507_v58 }
  0xa4   : > { %v594_v0 = vpack.c.bf16 %v562_v62, %v562_v62  ;;  %v571_v1 = vpack.c.bf16 %v539_v63, %v539_v63  ;;  %v547_v2 = vsel %vm483_vm11, %v419_v55, %v515_v60 }
  0xa5   : > { %619 = vst.msk [vmem:[%s964_s26 + $0x44] sm:$0xf] %vm601_vm3, %v586_v61  ;;  %v579_v3 = vpack.c.bf16 %v547_v2, %v547_v2  ;;  %v438_v4 = vpop.f32.mrf.mxu2  ;;  %v400_v8 = vpop.f32.mrf.mxu0 }
  0xa6   : > { %v458_v5 = vpop.f32.mrf.mxu3  ;;  %627 = vst.msk [vmem:[%s964_s26 + $0x64] sm:$0xf] %vm601_vm3, %v594_v0  ;;  %v439_v6 = vadd.f32 %v955_v17, %v438_v4  ;;  %v420_v9 = vpop.f32.mrf.mxu1  ;;  %v401_v10 = vadd.f32 %v955_v17, %v400_v8 }
  0xa7   : > { %v459_v7 = vadd.f32 %v955_v17, %v458_v5  ;;  %604 = vst.msk [vmem:[%s964_s26 + $0x8] sm:$0xf] %vm601_vm3, %v571_v1  ;;  %v421_v11 = vadd.f32 %v955_v17, %v420_v9 }
  0xa8   : > { %612 = vst.msk [vmem:[%s964_s26 + $0x28] sm:$0xf] %vm601_vm3, %v579_v3  ;;  %vm491_vm12 = vcmp.ge.f32.partialorder %v439_v6, 0.0  ;;  %v523_v12 = vmul.f32 0.2, %v439_v6  ;;  %vm476_vm14 = vcmp.ge.f32.partialorder %v401_v10, 0.0 }
  0xa9   : > { %vm499_vm13 = vcmp.ge.f32.partialorder %v459_v7, 0.0  ;;  %v531_v13 = vmul.f32 0.2, %v459_v7  ;;  %v508_v14 = vmul.f32 0.2, %v401_v10  ;;  %vm484_vm15 = vcmp.ge.f32.partialorder %v421_v11, 0.0 }
  0xaa   : > { %v555_v15 = vsel %vm491_vm12, %v439_v6, %v523_v12  ;;  %v516_v16 = vmul.f32 0.2, %v421_v11 }
  0xab   : > { %v587_v18 = vpack.c.bf16 %v555_v15, %v555_v15  ;;  %v563_v19 = vsel %vm499_vm13, %v459_v7, %v531_v13  ;;  %v540_v20 = vsel %vm476_vm14, %v401_v10, %v508_v14 }
  0xac   : > { %v595_v21 = vpack.c.bf16 %v563_v19, %v563_v19  ;;  %v572_v22 = vpack.c.bf16 %v540_v20, %v540_v20  ;;  %v548_v23 = vsel %vm484_vm15, %v421_v11, %v516_v16 }
  0xad   : > { %620 = vst.msk [vmem:[%s964_s26 + $0x48] sm:$0xf] %vm601_vm3, %v587_v18  ;;  %v580_v24 = vpack.c.bf16 %v548_v23, %v548_v23  ;;  %v440_v25 = vpop.f32.mrf.mxu2  ;;  %v403_v29 = vpop.f32.mrf.mxu0 }
  0xae   : > { %v460_v26 = vpop.f32.mrf.mxu3  ;;  %628 = vst.msk [vmem:[%s964_s26 + $0x68] sm:$0xf] %vm601_vm3, %v595_v21  ;;  %v441_v27 = vadd.f32 %v955_v17, %v440_v25  ;;  %v423_v30 = vpop.f32.mrf.mxu1  ;;  %v404_v31 = vadd.f32 %v955_v17, %v403_v29 }
  0xaf   : > { %v461_v28 = vadd.f32 %v955_v17, %v460_v26  ;;  %605 = vst.msk [vmem:[%s964_s26 + $0xc] sm:$0xf] %vm601_vm3, %v572_v22  ;;  %v424_v32 = vadd.f32 %v955_v17, %v423_v30 }
  0xb0   : > { %613 = vst.msk [vmem:[%s964_s26 + $0x2c] sm:$0xf] %vm601_vm3, %v580_v24  ;;  %vm492_vm0 = vcmp.ge.f32.partialorder %v441_v27, 0.0  ;;  %v524_v33 = vmul.f32 0.2, %v441_v27  ;;  %vm477_vm2 = vcmp.ge.f32.partialorder %v404_v31, 0.0 }
  0xb1   : > { %vm500_vm1 = vcmp.ge.f32.partialorder %v461_v28, 0.0  ;;  %v532_v34 = vmul.f32 0.2, %v461_v28  ;;  %v509_v35 = vmul.f32 0.2, %v404_v31  ;;  %vm485_vm4 = vcmp.ge.f32.partialorder %v424_v32, 0.0 }
  0xb2   : > { %v556_v36 = vsel %vm492_vm0, %v441_v27, %v524_v33  ;;  %v517_v37 = vmul.f32 0.2, %v424_v32 }
  0xb3   : > { %v588_v38 = vpack.c.bf16 %v556_v36, %v556_v36  ;;  %v564_v39 = vsel %vm500_vm1, %v461_v28, %v532_v34  ;;  %v541_v40 = vsel %vm477_vm2, %v404_v31, %v509_v35 }
  0xb4   : > { %v596_v41 = vpack.c.bf16 %v564_v39, %v564_v39  ;;  %v573_v42 = vpack.c.bf16 %v541_v40, %v541_v40  ;;  %v549_v43 = vsel %vm485_vm4, %v424_v32, %v517_v37 }
  0xb5   : > { %621 = vst.msk [vmem:[%s964_s26 + $0x4c] sm:$0xf] %vm601_vm3, %v588_v38  ;;  %v581_v44 = vpack.c.bf16 %v549_v43, %v549_v43  ;;  %v443_v45 = vpop.f32.mrf.mxu2  ;;  %v405_v49 = vpop.f32.mrf.mxu0 }
  0xb6   : > { %v463_v46 = vpop.f32.mrf.mxu3  ;;  %629 = vst.msk [vmem:[%s964_s26 + $0x6c] sm:$0xf] %vm601_vm3, %v596_v41  ;;  %v444_v47 = vadd.f32 %v955_v17, %v443_v45  ;;  %v425_v50 = vpop.f32.mrf.mxu1  ;;  %v406_v51 = vadd.f32 %v955_v17, %v405_v49 }
  0xb7   : > { %v464_v48 = vadd.f32 %v955_v17, %v463_v46  ;;  %606 = vst.msk [vmem:[%s964_s26 + $0x10] sm:$0xf] %vm601_vm3, %v573_v42  ;;  %v426_v52 = vadd.f32 %v955_v17, %v425_v50 }
  0xb8   : > { %614 = vst.msk [vmem:[%s964_s26 + $0x30] sm:$0xf] %vm601_vm3, %v581_v44  ;;  %vm493_vm5 = vcmp.ge.f32.partialorder %v444_v47, 0.0  ;;  %v525_v53 = vmul.f32 0.2, %v444_v47  ;;  %vm478_vm7 = vcmp.ge.f32.partialorder %v406_v51, 0.0 }
  0xb9   : > { %vm501_vm6 = vcmp.ge.f32.partialorder %v464_v48, 0.0  ;;  %v533_v54 = vmul.f32 0.2, %v464_v48  ;;  %v510_v55 = vmul.f32 0.2, %v406_v51  ;;  %vm486_vm8 = vcmp.ge.f32.partialorder %v426_v52, 0.0 }
  0xba   : > { %v557_v56 = vsel %vm493_vm5, %v444_v47, %v525_v53  ;;  %v518_v57 = vmul.f32 0.2, %v426_v52 }
  0xbb   : > { %v589_v58 = vpack.c.bf16 %v557_v56, %v557_v56  ;;  %v565_v59 = vsel %vm501_vm6, %v464_v48, %v533_v54  ;;  %v542_v60 = vsel %vm478_vm7, %v406_v51, %v510_v55 }
  0xbc   : > { %v597_v61 = vpack.c.bf16 %v565_v59, %v565_v59  ;;  %v574_v62 = vpack.c.bf16 %v542_v60, %v542_v60  ;;  %v550_v63 = vsel %vm486_vm8, %v426_v52, %v518_v57 }
  0xbd   : > { %622 = vst.msk [vmem:[%s964_s26 + $0x50] sm:$0xf] %vm601_vm3, %v589_v58  ;;  %v582_v0 = vpack.c.bf16 %v550_v63, %v550_v63  ;;  %v445_v1 = vpop.f32.mrf.mxu2  ;;  %v408_v5 = vpop.f32.mrf.mxu0 }
  0xbe   : > { %v465_v2 = vpop.f32.mrf.mxu3  ;;  %630 = vst.msk [vmem:[%s964_s26 + $0x70] sm:$0xf] %vm601_vm3, %v597_v61  ;;  %v446_v3 = vadd.f32 %v955_v17, %v445_v1  ;;  %v428_v6 = vpop.f32.mrf.mxu1  ;;  %v409_v7 = vadd.f32 %v955_v17, %v408_v5 }
  0xbf   : > { %v466_v4 = vadd.f32 %v955_v17, %v465_v2  ;;  %607 = vst.msk [vmem:[%s964_s26 + $0x14] sm:$0xf] %vm601_vm3, %v574_v62  ;;  %v429_v8 = vadd.f32 %v955_v17, %v428_v6 }
  0xc0   : > { %615 = vst.msk [vmem:[%s964_s26 + $0x34] sm:$0xf] %vm601_vm3, %v582_v0  ;;  %vm494_vm9 = vcmp.ge.f32.partialorder %v446_v3, 0.0  ;;  %v526_v9 = vmul.f32 0.2, %v446_v3  ;;  %vm479_vm11 = vcmp.ge.f32.partialorder %v409_v7, 0.0 }
  0xc1   : > { %vm502_vm10 = vcmp.ge.f32.partialorder %v466_v4, 0.0  ;;  %v534_v10 = vmul.f32 0.2, %v466_v4  ;;  %v511_v11 = vmul.f32 0.2, %v409_v7  ;;  %vm487_vm12 = vcmp.ge.f32.partialorder %v429_v8, 0.0 }
  0xc2   : > { %v558_v12 = vsel %vm494_vm9, %v446_v3, %v526_v9  ;;  %v519_v13 = vmul.f32 0.2, %v429_v8 }
  0xc3   : > { %v590_v14 = vpack.c.bf16 %v558_v12, %v558_v12  ;;  %v566_v15 = vsel %vm502_vm10, %v466_v4, %v534_v10  ;;  %v543_v16 = vsel %vm479_vm11, %v409_v7, %v511_v11 }
  0xc4   : > { %v598_v18 = vpack.c.bf16 %v566_v15, %v566_v15  ;;  %v575_v19 = vpack.c.bf16 %v543_v16, %v543_v16  ;;  %v551_v20 = vsel %vm487_vm12, %v429_v8, %v519_v13 }
  0xc5   : > { %623 = vst.msk [vmem:[%s964_s26 + $0x54] sm:$0xf] %vm601_vm3, %v590_v14  ;;  %v583_v21 = vpack.c.bf16 %v551_v20, %v551_v20  ;;  %v448_v22 = vpop.f32.mrf.mxu2  ;;  %v410_v26 = vpop.f32.mrf.mxu0 }
  0xc6   : > { %v468_v23 = vpop.f32.mrf.mxu3  ;;  %631 = vst.msk [vmem:[%s964_s26 + $0x74] sm:$0xf] %vm601_vm3, %v598_v18  ;;  %v449_v24 = vadd.f32 %v955_v17, %v448_v22  ;;  %v430_v27 = vpop.f32.mrf.mxu1  ;;  %v411_v28 = vadd.f32 %v955_v17, %v410_v26 }
  0xc7   : > { %v469_v25 = vadd.f32 %v955_v17, %v468_v23  ;;  %608 = vst.msk [vmem:[%s964_s26 + $0x18] sm:$0xf] %vm601_vm3, %v575_v19  ;;  %v431_v29 = vadd.f32 %v955_v17, %v430_v27 }
  0xc8   : > { %616 = vst.msk [vmem:[%s964_s26 + $0x38] sm:$0xf] %vm601_vm3, %v583_v21  ;;  %vm495_vm13 = vcmp.ge.f32.partialorder %v449_v24, 0.0  ;;  %v527_v30 = vmul.f32 0.2, %v449_v24  ;;  %vm480_vm15 = vcmp.ge.f32.partialorder %v411_v28, 0.0 }
  0xc9   : > { %vm503_vm14 = vcmp.ge.f32.partialorder %v469_v25, 0.0  ;;  %v535_v31 = vmul.f32 0.2, %v469_v25  ;;  %v512_v32 = vmul.f32 0.2, %v411_v28  ;;  %vm488_vm0 = vcmp.ge.f32.partialorder %v431_v29, 0.0 }
  0xca   : > { %v559_v33 = vsel %vm495_vm13, %v449_v24, %v527_v30  ;;  %v520_v34 = vmul.f32 0.2, %v431_v29 }
  0xcb   : > { %v591_v35 = vpack.c.bf16 %v559_v33, %v559_v33  ;;  %v567_v36 = vsel %vm503_vm14, %v469_v25, %v535_v31  ;;  %v544_v37 = vsel %vm480_vm15, %v411_v28, %v512_v32 }
  0xcc   : > { %v599_v38 = vpack.c.bf16 %v567_v36, %v567_v36  ;;  %v576_v39 = vpack.c.bf16 %v544_v37, %v544_v37  ;;  %v552_v40 = vsel %vm488_vm0, %v431_v29, %v520_v34 }
  0xcd   : > { %624 = vst.msk [vmem:[%s964_s26 + $0x58] sm:$0xf] %vm601_vm3, %v591_v35  ;;  %v584_v41 = vpack.c.bf16 %v552_v40, %v552_v40  ;;  %v450_v42 = vpop.f32.mrf.mxu2 }
  0xce   : > { %v470_v43 = vpop.f32.mrf.mxu3  ;;  %632 = vst.msk [vmem:[%s964_s26 + $0x78] sm:$0xf] %vm601_vm3, %v599_v38  ;;  %v451_v44 = vadd.f32 %v955_v17, %v450_v42 }
  0xcf   : > { %v471_v45 = vadd.f32 %v955_v17, %v470_v43  ;;  %609 = vst.msk [vmem:[%s964_s26 + $0x1c] sm:$0xf] %vm601_vm3, %v576_v39 }
  0xd0   : > { %617 = vst.msk [vmem:[%s964_s26 + $0x3c] sm:$0xf] %vm601_vm3, %v584_v41  ;;  %vm496_vm1 = vcmp.ge.f32.partialorder %v451_v44, 0.0  ;;  %v528_v46 = vmul.f32 0.2, %v451_v44 }
  0xd1   : > { %vm504_vm2 = vcmp.ge.f32.partialorder %v471_v45, 0.0  ;;  %v536_v47 = vmul.f32 0.2, %v471_v45 }
  0xd2   : > { %v560_v48 = vsel %vm496_vm1, %v451_v44, %v528_v46 }
  0xd3   : > { %v592_v49 = vpack.c.bf16 %v560_v48, %v560_v48  ;;  %v568_v50 = vsel %vm504_vm2, %v471_v45, %v536_v47 }
  0xd4   : > { %v600_v51 = vpack.c.bf16 %v568_v50, %v568_v50 }
  0xd5   : > { %625 = vst.msk [vmem:[%s964_s26 + $0x5c] sm:$0xf] %vm601_vm3, %v592_v49 }
  0xd6   : > { %633 = vst.msk [vmem:[%s964_s26 + $0x7c] sm:$0xf] %vm601_vm3, %v600_v51 }
  0xd7 PF: > { %s13_s14 = sadd.s32 1, %s885_s14   ;;  %s1073_s12 = smov %s881_s13 }
  0xd8   : > { %p10_p5 = scmp.ge.s32.totalorder %s13_s14, 4   ;;  %s1074_s13 = smov %s1076_s15 }
  0xda   :  { %12 = sbr.rel (!%p10_p5) target bundleno = 2 (0x2), region = 62 }

// kernel: _lambda_.6
= control target key start
LH: loop header
LB: loop body
LE: loop exit
PB: predicated region body
PF: predicated region fallthrough
CT: control target
= control target key end

     0   :  { %s683_s9 = smov 0   ;;  %s685_s10 = smov 0   ;;  %s836_s0 = inlined_call_operand.vmem [shape: bf16[2,64,128], index: 0, kind: input, shape index: {}]   ;;  %s837_s1 = inlined_call_operand.vmem [shape: bf16[128,16], index: 1, kind: input, shape index: {}]   ;;  %s838_s2 = inlined_call_operand.vmem [shape: bf16[2,64,16], index: 2, kind: output, shape index: {}]  }
   0x1   :  { %s687_s11 = smov 0  }
   0x2 LB: > { %s24_s12 = sadd.s32 1, %s661_s10  ;;  %p521_p0 = scmp.ge.s32.totalorder %s665_s11, 1  ;;  %s665_s11 = sphi %s687_s11, %s12_s11   ;;  %s661_s10 = sphi %s685_s10, %s840_s10   ;;  %s657_s9 = sphi %s683_s9, %s839_s9  }
   0x3   : > { %p26_p1 = scmp.ge.s32.totalorder %s24_s12, 2  ;;  %p131_p2 = scmp.lt.s32.totalorder %s665_s11, 3 }
   0x5   : > { %s842_s12 = smov (%p26_p1, %s24_s12), 0  ;;  %p132_p3 = pnand %p521_p0, %p131_p2 }
   0x6   : > { %p158_p4 = scmp.lt.s32.totalorder (!%p132_p3), %s657_s9, 1 }
   0x7   : > { %135 = sbr.rel (%p132_p3) target bundleno = 259 (0x103), region = 28 }
   0xc   : > { %v589_v0 = vld [vmem:[%s837_s1 + $0x38] sm:$0xff]  ;;  %v588_v1 = vld [vmem:[%s837_s1 + $0x30] sm:$0xff]  ;;  %v587_v2 = vld [vmem:[%s837_s1 + $0x28] sm:$0xff]  ;;  %s844_s9 = smov (!%p158_p4, %s657_s9), 1  ;;  %vm297_vm0 = vcmask 130048   ;;  %v667_v24 = vmov 64.0  }
   0xd   : > { %268 = vmatpush.bf16.msra.mxu0 %v589_v0  ;;  %590 = vmatpush.bf16.msra.mxu1 %v589_v0  ;;  %v586_v3 = vld [vmem:[%s837_s1 + $0x20] sm:$0xff]  ;;  %v585_v4 = vld [vmem:[%s837_s1 + $0x18] sm:$0xff]  ;;  %v584_v5 = vld [vmem:[%s837_s1 + $0x10] sm:$0xff]  ;;  %s576_s27 = sshll.u32 %s844_s9, 5  ;;  %639 = vrcp.f32 %v667_v24  ;;  %vm439_vm5 = vcmask 125952  }
   0xe   : > { %591 = vmatpush.bf16.msra.mxu2 %v589_v0  ;;  %592 = vmatpush.bf16.msra.mxu3 %v589_v0  ;;  %v583_v6 = vld [vmem:[%s837_s1 + $0x8] sm:$0xff]  ;;  %v582_v7 = vld [vmem:[%s837_s1] sm:$0xff]  ;;  %s165_s4 = scalar_lea.vmem %s836_s0, %s576_s27  ;;  %s171_s7 = scalar_lea.vmem %s838_s2, %s576_s27 }
   0xf   : > { %v578_v8 = vld [vmem:[%s165_s4] sm:$0xff]  ;;  %v579_v9 = vld [vmem:[%s165_s4 + $0x8] sm:$0xff]  ;;  %v580_v10 = vld [vmem:[%s165_s4 + $0x10] sm:$0xff] }
  0x10   : > { %v581_v11 = vld [vmem:[%s165_s4 + $0x18] sm:$0xff] }
  0x11   : > { %269 = vmatpush.bf16.msra.mxu0 %v588_v1  ;;  %593 = vmatpush.bf16.msra.mxu1 %v588_v1 }
  0x12   : > { %594 = vmatpush.bf16.msra.mxu2 %v588_v1  ;;  %595 = vmatpush.bf16.msra.mxu3 %v588_v1 }
  0x13   : > { %v640_v41 = vpop.eup %639 }
  0x14   : > { %v340_v55 = vmul.f32 64.0, %v640_v41  ;;  %vm344_vm1 = vweird.f32 %v640_v41 }
  0x15   : > { %270 = vmatpush.bf16.msra.mxu0 %v587_v2  ;;  %596 = vmatpush.bf16.msra.mxu1 %v587_v2 }
  0x16   : > { %597 = vmatpush.bf16.msra.mxu2 %v587_v2  ;;  %598 = vmatpush.bf16.msra.mxu3 %v587_v2  ;;  %v341_v1 = vsub.f32 1.0, %v340_v55 }
  0x19   : > { %271 = vmatpush.bf16.msra.mxu0 %v586_v3  ;;  %599 = vmatpush.bf16.msra.mxu1 %v586_v3 }
  0x1a   : > { %600 = vmatpush.bf16.msra.mxu2 %v586_v3  ;;  %601 = vmatpush.bf16.msra.mxu3 %v586_v3 }
  0x1d   : > { %272 = vmatpush.bf16.msra.mxu0 %v585_v4  ;;  %602 = vmatpush.bf16.msra.mxu1 %v585_v4 }
  0x1e   : > { %603 = vmatpush.bf16.msra.mxu2 %v585_v4  ;;  %604 = vmatpush.bf16.msra.mxu3 %v585_v4 }
  0x21   : > { %273 = vmatpush.bf16.msra.mxu0 %v584_v5  ;;  %605 = vmatpush.bf16.msra.mxu1 %v584_v5 }
  0x22   : > { %606 = vmatpush.bf16.msra.mxu2 %v584_v5  ;;  %607 = vmatpush.bf16.msra.mxu3 %v584_v5 }
  0x25   : > { %274 = vmatpush.bf16.msra.mxu0 %v583_v6  ;;  %608 = vmatpush.bf16.msra.mxu1 %v583_v6 }
  0x26   : > { %609 = vmatpush.bf16.msra.mxu2 %v583_v6  ;;  %610 = vmatpush.bf16.msra.mxu3 %v583_v6 }
  0x29   : > { %275 = vmatpush.bf16.msra.mxu0 %v582_v7  ;;  %611 = vmatpush.bf16.msra.mxu1 %v582_v7 }
  0x2a   : > { %612 = vmatpush.bf16.msra.mxu2 %v582_v7  ;;  %613 = vmatpush.bf16.msra.mxu3 %v582_v7  ;;  %v342_v7 = vmul.f32 %v640_v41, %v341_v1 }
  0x2c   : > { %276 = vmatmul.bf16.vlgmr.msra.gmra.mxu0 %v578_v8  ;;  %281 = vmatmul.bf16.vlgmr.msra.gmra.mxu1 %v579_v9 }
  0x2d   : > { %286 = vmatmul.bf16.vlgmr.msra.gmra.mxu2 %v580_v10  ;;  %291 = vmatmul.bf16.vlgmr.msra.gmra.mxu3 %v581_v11 }
  0xa9   : > { %v277_v12 = vpop.f32.mrf.mxu0  ;;  %v282_v13 = vpop.f32.mrf.mxu1 }
  0xaa   : > { %298 = vst.msk [vmem:[#allocation2] sm:$0xff] %vm297_vm0, %v277_v12  ;;  %v343_v12 = vadd.f32 %v640_v41, %v342_v7 }
  0xab   : > { %300 = vst.msk [vmem:[#allocation2 + $0x10] sm:$0xff] %vm297_vm0, %v282_v13 }
  0xb0   : > { %v287_v14 = vpop.f32.mrf.mxu2  ;;  %v292_v15 = vpop.f32.mrf.mxu3 }
  0xb1   : > { %302 = vst.msk [vmem:[#allocation2 + $0x20] sm:$0xff] %vm297_vm0, %v287_v14  ;;  %v279_v16 = vpop.f32.mrf.mxu0  ;;  %v284_v17 = vpop.f32.mrf.mxu1  ;;  %v743_v18 = vld [vmem:[#allocation2] sm:$0xff] }
  0xb2   : > { %304 = vst.msk [vmem:[#allocation2 + $0x30] sm:$0xff] %vm297_vm0, %v292_v15  ;;  %v745_v19 = vld [vmem:[#allocation2 + $0x10] sm:$0xff]  ;;  %v347_v22 = vmul.f32 %v743_v18, %v743_v18  ;;  %v318_v25 = vsel %vm297_vm0, %v743_v18, 0.0 }
  0xb3   : > { %299 = vst.msk [vmem:[#allocation2 + $0x8] sm:$0xff] %vm297_vm0, %v279_v16  ;;  %v349_v26 = vmul.f32 %v745_v19, %v745_v19  ;;  %v321_v33 = vsel %vm297_vm0, %v745_v19, 0.0 }
  0xb4   : > { %301 = vst.msk [vmem:[#allocation2 + $0x18] sm:$0xff] %vm297_vm0, %v284_v17  ;;  %v355_v32 = vsel %vm297_vm0, %v347_v22, 0.0  ;;  %v345_v17 = vsel %vm344_vm1, %v640_v41, %v343_v12 }
  0xb5   : > { %v358_v38 = vsel %vm297_vm0, %v349_v26, 0.0 }
  0xb8   : > { %v289_v20 = vpop.f32.mrf.mxu2  ;;  %v294_v21 = vpop.f32.mrf.mxu3  ;;  %v763_v30 = vld [vmem:[#allocation2 + $0x20] sm:$0xff] }
  0xb9   : > { %303 = vst.msk [vmem:[#allocation2 + $0x28] sm:$0xff] %vm297_vm0, %v289_v20  ;;  %v351_v39 = vmul.f32 %v763_v30, %v763_v30  ;;  %v776_v42 = vld [vmem:[#allocation2 + $0x30] sm:$0xff]  ;;  %v325_v46 = vsel %vm297_vm0, %v763_v30, 0.0 }
  0xba   : > { %v750_v23 = vld [vmem:[#allocation2 + $0x8] sm:$0xff]  ;;  %305 = vst.msk [vmem:[#allocation2 + $0x38] sm:$0xff] %vm297_vm0, %v294_v21  ;;  %v353_v53 = vmul.f32 %v776_v42, %v776_v42  ;;  %v329_v58 = vsel %vm297_vm0, %v776_v42, 0.0 }
  0xbb   : > { %v319_v27 = vsel %vm297_vm0, %v750_v23, 0.0  ;;  %v348_v28 = vmul.f32 %v750_v23, %v750_v23  ;;  %v761_v29 = vld [vmem:[#allocation2 + $0x18] sm:$0xff]  ;;  %v362_v52 = vsel %vm297_vm0, %v351_v39, 0.0 }
  0xbc   : > { %v320_v31 = vadd.f32 %v319_v27, %v318_v25  ;;  %v350_v35 = vmul.f32 %v761_v29, %v761_v29  ;;  %v323_v40 = vsel %vm297_vm0, %v761_v29, 0.0  ;;  %v366_v63 = vsel %vm297_vm0, %v353_v53, 0.0 }
  0xbd   : > { %v356_v34 = vsel %vm297_vm0, %v348_v28, 0.0 }
  0xbe   : > { %v357_v36 = vadd.f32 %v356_v34, %v355_v32  ;;  %v322_v37 = vadd.f32 %v321_v33, %v320_v31  ;;  %v360_v47 = vsel %vm297_vm0, %v350_v35, 0.0 }
  0xc0   : > { %v324_v43 = vadd.f32 %v323_v40, %v322_v37  ;;  %v359_v44 = vadd.f32 %v358_v38, %v357_v36  ;;  %v778_v45 = vld [vmem:[#allocation2 + $0x28] sm:$0xff] }
  0xc1   : > { %v352_v48 = vmul.f32 %v778_v45, %v778_v45  ;;  %v785_v51 = vld [vmem:[#allocation2 + $0x38] sm:$0xff]  ;;  %v327_v54 = vsel %vm297_vm0, %v778_v45, 0.0 }
  0xc2   : > { %v361_v49 = vadd.f32 %v360_v47, %v359_v44  ;;  %v326_v50 = vadd.f32 %v325_v46, %v324_v43  ;;  %v354_v60 = vmul.f32 %v785_v51, %v785_v51  ;;  %v331_v0 = vsel %vm297_vm0, %v785_v51, 0.0 }
  0xc3   : > { %v364_v59 = vsel %vm297_vm0, %v352_v48, 0.0 }
  0xc4   : > { %v328_v56 = vadd.f32 %v327_v54, %v326_v50  ;;  %v363_v57 = vadd.f32 %v362_v52, %v361_v49  ;;  %v368_v4 = vsel %vm297_vm0, %v354_v60, 0.0 }
  0xc6   : > { %v365_v61 = vadd.f32 %v364_v59, %v363_v57  ;;  %v330_v62 = vadd.f32 %v329_v58, %v328_v56 }
  0xc8   : > { %v332_v2 = vadd.f32 %v331_v0, %v330_v62  ;;  %v367_v3 = vadd.f32 %v366_v63, %v365_v61 }
  0xca   : > { %v333_v5 = vrot.slane %v332_v2, 4  ;;  %v369_v6 = vadd.f32 %v368_v4, %v367_v3 }
  0xcc   : > { %v334_v8 = vadd.f32 %v333_v5, %v332_v2  ;;  %v370_v9 = vrot.slane %v369_v6, 4 }
  0xce   : > { %v335_v10 = vrot.slane %v334_v8, 2  ;;  %v371_v11 = vadd.f32 %v370_v9, %v369_v6 }
  0xd0   : > { %v336_v13 = vadd.f32 %v335_v10, %v334_v8  ;;  %v372_v14 = vrot.slane %v371_v11, 2 }
  0xd2   : > { %v337_v15 = vrot.slane %v336_v13, 1  ;;  %v373_v16 = vadd.f32 %v372_v14, %v371_v11 }
  0xd4   : > { %v338_v20 = vadd.f32 %v337_v15, %v336_v13  ;;  %v374_v21 = vrot.slane %v373_v16, 1 }
  0xd6   : > { %v346_v22 = vmul.f32 %v345_v17, %v338_v20  ;;  %v375_v24 = vadd.f32 %v374_v21, %v373_v16 }
  0xd8   : > { %v376_v25 = vmul.f32 %v375_v24, %v345_v17  ;;  %v377_v26 = vmul.f32 %v346_v22, %v346_v22  ;;  %v380_v37 = vsub.f32 %v743_v18, %v346_v22  ;;  %v381_v39 = vsub.f32 %v750_v23, %v346_v22 }
  0xd9   : > { %v382_v40 = vsub.f32 %v745_v19, %v346_v22  ;;  %v383_v41 = vsub.f32 %v761_v29, %v346_v22  ;;  %v384_v43 = vsub.f32 %v763_v30, %v346_v22  ;;  %v385_v44 = vsub.f32 %v778_v45, %v346_v22 }
  0xda   : > { %v378_v27 = vsub.f32 %v376_v25, %v377_v26  ;;  %v386_v46 = vsub.f32 %v776_v42, %v346_v22  ;;  %v387_v47 = vsub.f32 %v785_v51, %v346_v22 }
  0xdc   : > { %v379_v28 = vmax.f32 %v378_v27, 0.0 }
  0xde   : > { %v388_v31 = vadd.f32 1e-05, %v379_v28 }
  0xe0   : > { %641 = vrsqrt.f32 %v388_v31  ;;  %vm395_vm3 = vweird.f32 %v388_v31 }
  0xe6   : > { %v642_v32 = vpop.eup %641 }
  0xe7   : > { %v390_v33 = vmul.f32 %v642_v32, %v388_v31  ;;  %vm396_vm2 = vweird.f32 %v642_v32 }
  0xe8   : > { %vm397_vm4 = vmor %vm395_vm3, %vm396_vm2 }
  0xe9   : > { %v391_v34 = vmul.f32 %v642_v32, %v390_v33 }
  0xeb   : > { %v392_v35 = vmul.f32 0.5, %v391_v34 }
  0xed   : > { %v393_v36 = vsub.f32 1.5, %v392_v35 }
  0xef   : > { %v394_v38 = vmul.f32 %v642_v32, %v393_v36 }
  0xf1   : > { %v398_v48 = vsel %vm397_vm4, %v642_v32, %v394_v38 }
  0xf2   : > { %v399_v49 = vmul.f32 %v398_v48, %v380_v37  ;;  %v400_v18 = vmul.f32 %v398_v48, %v381_v39  ;;  %v401_v50 = vmul.f32 %v398_v48, %v382_v40  ;;  %v402_v52 = vmul.f32 %v398_v48, %v383_v41 }
  0xf3   : > { %v403_v53 = vmul.f32 %v398_v48, %v384_v43  ;;  %v404_v23 = vmul.f32 %v398_v48, %v385_v44  ;;  %v405_v54 = vmul.f32 %v398_v48, %v386_v46  ;;  %v406_v19 = vmul.f32 %v398_v48, %v387_v47 }
  0xf4   : > { %vm407_vm6 = vcmp.ge.f32.partialorder %v399_v49, 0.0  ;;  %vm408_vm7 = vcmp.ge.f32.partialorder %v400_v18, 0.0  ;;  %vm409_vm8 = vcmp.ge.f32.partialorder %v401_v50, 0.0  ;;  %vm410_vm9 = vcmp.ge.f32.partialorder %v402_v52, 0.0 }
  0xf5   : > { %vm411_vm10 = vcmp.ge.f32.partialorder %v403_v53, 0.0  ;;  %vm412_vm11 = vcmp.ge.f32.partialorder %v404_v23, 0.0  ;;  %vm413_vm12 = vcmp.ge.f32.partialorder %v405_v54, 0.0  ;;  %v415_v29 = vmul.f32 0.2, %v399_v49 }
  0xf6   : > { %v416_v30 = vmul.f32 0.2, %v400_v18  ;;  %v417_v42 = vmul.f32 0.2, %v401_v50  ;;  %v418_v45 = vmul.f32 0.2, %v402_v52 }
  0xf7   : > { %v419_v51 = vmul.f32 0.2, %v403_v53  ;;  %v420_v55 = vmul.f32 0.2, %v404_v23  ;;  %v421_v56 = vmul.f32 0.2, %v405_v54  ;;  %v423_v58 = vsel %vm407_vm6, %v399_v49, %v415_v29 }
  0xf8   : > { %v422_v57 = vmul.f32 0.2, %v406_v19  ;;  %v424_v59 = vsel %vm408_vm7, %v400_v18, %v416_v30  ;;  %vm414_vm13 = vcmp.ge.f32.partialorder %v406_v19, 0.0  ;;  %v425_v60 = vsel %vm409_vm8, %v401_v50, %v417_v42 }
  0xf9   : > { %v426_v61 = vsel %vm410_vm9, %v402_v52, %v418_v45  ;;  %v427_v62 = vsel %vm411_vm10, %v403_v53, %v419_v51  ;;  %v428_v63 = vsel %vm412_vm11, %v404_v23, %v420_v55  ;;  %v431_v0 = vpack.c.bf16 %v423_v58, %v423_v58 }
  0xfa   : > { %v432_v1 = vpack.c.bf16 %v424_v59, %v424_v59  ;;  %v429_v2 = vsel %vm413_vm12, %v405_v54, %v421_v56  ;;  %v433_v3 = vpack.c.bf16 %v425_v60, %v425_v60  ;;  %v434_v4 = vpack.c.bf16 %v426_v61, %v426_v61 }
  0xfb   : > { %v430_v5 = vsel %vm414_vm13, %v406_v19, %v422_v57  ;;  %v435_v6 = vpack.c.bf16 %v427_v62, %v427_v62  ;;  %440 = vst.msk [vmem:[%s171_s7] sm:$0xf] %vm439_vm5, %v431_v0  ;;  %v436_v7 = vpack.c.bf16 %v428_v63, %v428_v63  ;;  %v437_v8 = vpack.c.bf16 %v429_v2, %v429_v2 }
  0xfc   : > { %441 = vst.msk [vmem:[%s171_s7 + $0x4] sm:$0xf] %vm439_vm5, %v432_v1  ;;  %v438_v9 = vpack.c.bf16 %v430_v5, %v430_v5 }
  0xfd   : > { %442 = vst.msk [vmem:[%s171_s7 + $0x8] sm:$0xf] %vm439_vm5, %v433_v3 }
  0xfe   : > { %443 = vst.msk [vmem:[%s171_s7 + $0xc] sm:$0xf] %vm439_vm5, %v434_v4 }
  0xff   : > { %444 = vst.msk [vmem:[%s171_s7 + $0x10] sm:$0xf] %vm439_vm5, %v435_v6 }
 0x100   : > { %445 = vst.msk [vmem:[%s171_s7 + $0x14] sm:$0xf] %vm439_vm5, %v436_v7 }
 0x101   : > { %446 = vst.msk [vmem:[%s171_s7 + $0x18] sm:$0xf] %vm439_vm5, %v437_v8 }
 0x102   : > { %447 = vst.msk [vmem:[%s171_s7 + $0x1c] sm:$0xf] %vm439_vm5, %v438_v9 }
 0x103 PF: > { %s12_s11 = sadd.s32 1, %s665_s11   ;;  %s839_s9 = smov %s661_s10 }
 0x104   : > { %p9_p5 = scmp.ge.s32.totalorder %s12_s11, 4   ;;  %s840_s10 = smov %s842_s12 }
 0x106   :  { %11 = sbr.rel (!%p9_p5) target bundleno = 2 (0x2), region = 62 }

// kernel: _lambda_.7
= control target key start
LH: loop header
LB: loop body
LE: loop exit
PB: predicated region body
PF: predicated region fallthrough
CT: control target
= control target key end

     0   :  { %s654_s9 = smov 0   ;;  %s656_s10 = smov 0   ;;  %s745_s0 = inlined_call_operand.vmem [shape: bf16[2,16,256], index: 0, kind: input, shape index: {}]   ;;  %s746_s1 = inlined_call_operand.vmem [shape: bf16[256,32], index: 1, kind: input, shape index: {}]   ;;  %s747_s2 = inlined_call_operand.vmem [shape: bf16[2,16,32], index: 2, kind: output, shape index: {}]  }
   0x1   :  { %s658_s11 = smov 0  }
   0x2 LB: > { %s24_s12 = sadd.s32 1, %s632_s10  ;;  %p486_p0 = scmp.ge.s32.totalorder %s636_s11, 1  ;;  %s636_s11 = sphi %s658_s11, %s12_s11   ;;  %s632_s10 = sphi %s656_s10, %s749_s10   ;;  %s628_s9 = sphi %s654_s9, %s748_s9  }
   0x3   : > { %p26_p1 = scmp.ge.s32.totalorder %s24_s12, 2  ;;  %p132_p2 = scmp.lt.s32.totalorder %s636_s11, 3 }
   0x5   : > { %s751_s12 = smov (%p26_p1, %s24_s12), 0  ;;  %p133_p3 = pnand %p486_p0, %p132_p2 }
   0x6   : > { %p160_p4 = scmp.lt.s32.totalorder (!%p133_p3), %s628_s9, 1 }
   0x7   : > { %136 = sbr.rel (%p133_p3) target bundleno = 241 (0xf1), region = 28 }
   0xc   : > { %v576_v0 = vld [vmem:[%s746_s1 + $0x38] sm:$0xff]  ;;  %v575_v2 = vld [vmem:[%s746_s1 + $0x30] sm:$0xff]  ;;  %v574_v4 = vld [vmem:[%s746_s1 + $0x28] sm:$0xff]  ;;  %s753_s9 = smov (!%p160_p4, %s628_s9), 1  ;;  %vm343_vm0 = vcmask 261120   ;;  %v638_v25 = vmov 16.0  }
   0xd   : > { %v584_v1 = vld [vmem:[%s746_s1 + $0x78] sm:$0xff]  ;;  %315 = vmatpush.bf16.msra.mxu0 %v576_v0  ;;  %v583_v3 = vld [vmem:[%s746_s1 + $0x70] sm:$0xff]  ;;  %v582_v5 = vld [vmem:[%s746_s1 + $0x68] sm:$0xff]  ;;  %s565_s13 = sshll.u32 %s753_s9, 4  ;;  %610 = vrcp.f32 %v638_v25  ;;  %s566_s25 = sshll.u32 %s753_s9, 3  ;;  %vm407_vm7 = vcmask 257024  }
   0xe   : > { %329 = vmatpush.bf16.msra.mxu1 %v584_v1  ;;  %v573_v6 = vld [vmem:[%s746_s1 + $0x20] sm:$0xff]  ;;  %v572_v8 = vld [vmem:[%s746_s1 + $0x18] sm:$0xff]  ;;  %v571_v10 = vld [vmem:[%s746_s1 + $0x10] sm:$0xff]  ;;  %s168_s20 = scalar_lea.vmem %s745_s0, %s565_s13  ;;  %s174_s28 = scalar_lea.vmem %s747_s2, %s566_s25 }
   0xf   : > { %v581_v7 = vld [vmem:[%s746_s1 + $0x60] sm:$0xff]  ;;  %v580_v9 = vld [vmem:[%s746_s1 + $0x58] sm:$0xff]  ;;  %v579_v11 = vld [vmem:[%s746_s1 + $0x50] sm:$0xff] }
  0x10   : > { %v570_v12 = vld [vmem:[%s746_s1 + $0x8] sm:$0xff]  ;;  %v569_v14 = vld [vmem:[%s746_s1] sm:$0xff] }
  0x11   : > { %316 = vmatpush.bf16.msra.mxu0 %v575_v2  ;;  %v578_v13 = vld [vmem:[%s746_s1 + $0x48] sm:$0xff]  ;;  %v577_v15 = vld [vmem:[%s746_s1 + $0x40] sm:$0xff] }
  0x12   : > { %330 = vmatpush.bf16.msra.mxu1 %v583_v3  ;;  %v493_v16 = vld [vmem:[%s168_s20] sm:$0xf]  ;;  %v568_v17 = vld [vmem:[%s168_s20 + $0x4] sm:$0xf0]  ;;  %v567_v18 = vld [vmem:[%s168_s20 + $0x4] sm:$0xf] }
  0x13   : > { %v495_v19 = vld [vmem:[%s168_s20 + $0x8] sm:$0xf0]  ;;  %v494_v20 = vor.u32 %v568_v17, %v493_v16  ;;  %v611_v29 = vpop.eup %610 }
  0x14   : > { %v498_v21 = vor.u32 %v567_v18, %v495_v19  ;;  %v362_v31 = vmul.f32 16.0, %v611_v29  ;;  %vm366_vm1 = vweird.f32 %v611_v29 }
  0x15   : > { %317 = vmatpush.bf16.msra.mxu0 %v574_v4 }
  0x16   : > { %331 = vmatpush.bf16.msra.mxu1 %v582_v5  ;;  %v363_v36 = vsub.f32 1.0, %v362_v31 }
  0x18   : > { %v364_v43 = vmul.f32 %v611_v29, %v363_v36 }
  0x19   : > { %318 = vmatpush.bf16.msra.mxu0 %v573_v6 }
  0x1a   : > { %332 = vmatpush.bf16.msra.mxu1 %v581_v7  ;;  %v365_v48 = vadd.f32 %v611_v29, %v364_v43 }
  0x1c   : > { %v367_v53 = vsel %vm366_vm1, %v611_v29, %v365_v48 }
  0x1d   : > { %319 = vmatpush.bf16.msra.mxu0 %v572_v8 }
  0x1e   : > { %333 = vmatpush.bf16.msra.mxu1 %v580_v9 }
  0x21   : > { %320 = vmatpush.bf16.msra.mxu0 %v571_v10 }
  0x22   : > { %334 = vmatpush.bf16.msra.mxu1 %v579_v11 }
  0x25   : > { %321 = vmatpush.bf16.msra.mxu0 %v570_v12 }
  0x26   : > { %335 = vmatpush.bf16.msra.mxu1 %v578_v13 }
  0x29   : > { %322 = vmatpush.bf16.msra.mxu0 %v569_v14 }
  0x2a   : > { %336 = vmatpush.bf16.msra.mxu1 %v577_v15 }
  0x2c   : > { %323 = vmatmul.bf16.vlgmr.msra.gmra.mxu0 %v494_v20 }
  0x2d   : > { %337 = vmatmul.bf16.vlgmr.msra.gmra.mxu1 %v498_v21 }
  0xa9   : > { %v324_v22 = vpop.f32.mrf.mxu0 }
  0xaa   : > { %v338_v23 = vpop.f32.mrf.mxu1 }
  0xab   : > { %v339_v24 = vadd.f32 %v338_v23, %v324_v22 }
  0xad   : > { %344 = vst.msk [vmem:[#allocation2] sm:$0xff] %vm343_vm0, %v339_v24 }
  0xb1   : > { %v326_v26 = vpop.f32.mrf.mxu0 }
  0xb2   : > { %v340_v27 = vpop.f32.mrf.mxu1 }
  0xb3   : > { %v341_v28 = vadd.f32 %v340_v27, %v326_v26 }
  0xb4   : > { %v350_v30 = vld [vmem:[#allocation2] sm:$0xff] }
  0xb5   : > { %345 = vst.msk [vmem:[#allocation2 + $0x8] sm:$0xff] %vm343_vm0, %v341_v28  ;;  %v369_v32 = vmul.f32 %v350_v30, %v350_v30  ;;  %v352_v34 = vsel %vm343_vm0, %v350_v30, 0.0 }
  0xb7   : > { %v371_v39 = vsel %vm343_vm0, %v369_v32, 0.0 }
  0xbc   : > { %v351_v33 = vld [vmem:[#allocation2 + $0x8] sm:$0xff] }
  0xbd   : > { %v353_v35 = vsel %vm343_vm0, %v351_v33, 0.0  ;;  %v370_v37 = vmul.f32 %v351_v33, %v351_v33 }
  0xbe   : > { %v354_v38 = vadd.f32 %v353_v35, %v352_v34 }
  0xbf   : > { %v372_v40 = vsel %vm343_vm0, %v370_v37, 0.0 }
  0xc0   : > { %v355_v41 = vrot.slane %v354_v38, 4  ;;  %v373_v42 = vadd.f32 %v372_v40, %v371_v39 }
  0xc2   : > { %v356_v44 = vadd.f32 %v355_v41, %v354_v38  ;;  %v374_v45 = vrot.slane %v373_v42, 4 }
  0xc4   : > { %v357_v46 = vrot.slane %v356_v44, 2  ;;  %v375_v47 = vadd.f32 %v374_v45, %v373_v42 }
  0xc6   : > { %v358_v49 = vadd.f32 %v357_v46, %v356_v44  ;;  %v376_v50 = vrot.slane %v375_v47, 2 }
  0xc8   : > { %v359_v51 = vrot.slane %v358_v49, 1  ;;  %v377_v52 = vadd.f32 %v376_v50, %v375_v47 }
  0xca   : > { %v360_v54 = vadd.f32 %v359_v51, %v358_v49  ;;  %v378_v55 = vrot.slane %v377_v52, 1 }
  0xcc   : > { %v368_v56 = vmul.f32 %v367_v53, %v360_v54  ;;  %v379_v57 = vadd.f32 %v378_v55, %v377_v52 }
  0xce   : > { %v380_v58 = vmul.f32 %v379_v57, %v367_v53  ;;  %v381_v59 = vmul.f32 %v368_v56, %v368_v56  ;;  %v384_v5 = vsub.f32 %v350_v30, %v368_v56  ;;  %v385_v6 = vsub.f32 %v351_v33, %v368_v56 }
  0xd0   : > { %v382_v60 = vsub.f32 %v380_v58, %v381_v59 }
  0xd2   : > { %v383_v61 = vmax.f32 %v382_v60, 0.0 }
  0xd4   : > { %v386_v62 = vadd.f32 1e-05, %v383_v61 }
  0xd6   : > { %612 = vrsqrt.f32 %v386_v62  ;;  %vm393_vm3 = vweird.f32 %v386_v62 }
  0xdc   : > { %v613_v63 = vpop.eup %612 }
  0xdd   : > { %v388_v0 = vmul.f32 %v613_v63, %v386_v62  ;;  %vm394_vm2 = vweird.f32 %v613_v63 }
  0xde   : > { %vm395_vm4 = vmor %vm393_vm3, %vm394_vm2 }
  0xdf   : > { %v389_v1 = vmul.f32 %v613_v63, %v388_v0 }
  0xe1   : > { %v390_v2 = vmul.f32 0.5, %v389_v1 }
  0xe3   : > { %v391_v3 = vsub.f32 1.5, %v390_v2 }
  0xe5   : > { %v392_v4 = vmul.f32 %v613_v63, %v391_v3 }
  0xe7   : > { %v396_v7 = vsel %vm395_vm4, %v613_v63, %v392_v4 }
  0xe8   : > { %v397_v8 = vmul.f32 %v396_v7, %v384_v5  ;;  %v398_v9 = vmul.f32 %v396_v7, %v385_v6 }
  0xea   : > { %vm399_vm5 = vcmp.ge.f32.partialorder %v397_v8, 0.0  ;;  %vm400_vm6 = vcmp.ge.f32.partialorder %v398_v9, 0.0  ;;  %v401_v10 = vmul.f32 0.2, %v397_v8  ;;  %v402_v11 = vmul.f32 0.2, %v398_v9 }
  0xec   : > { %v403_v12 = vsel %vm399_vm5, %v397_v8, %v401_v10  ;;  %v404_v13 = vsel %vm400_vm6, %v398_v9, %v402_v11 }
  0xed   : > { %v405_v14 = vpack.c.bf16 %v403_v12, %v403_v12  ;;  %v406_v15 = vpack.c.bf16 %v404_v13, %v404_v13 }
  0xef   : > { %408 = vst.msk [vmem:[%s174_s28] sm:$0xf] %vm407_vm7, %v405_v14 }
  0xf0   : > { %409 = vst.msk [vmem:[%s174_s28 + $0x4] sm:$0xf] %vm407_vm7, %v406_v15 }
  0xf1 PF: > { %s12_s11 = sadd.s32 1, %s636_s11   ;;  %s748_s9 = smov %s632_s10 }
  0xf2   : > { %p9_p5 = scmp.ge.s32.totalorder %s12_s11, 4   ;;  %s749_s10 = smov %s751_s12 }
  0xf4   :  { %11 = sbr.rel (!%p9_p5) target bundleno = 2 (0x2), region = 62 }

// kernel: _lambda_.8
= control target key start
LH: loop header
LB: loop body
LE: loop exit
PB: predicated region body
PF: predicated region fallthrough
CT: control target
= control target key end

     0   :  { %s918_s9 = smov 0   ;;  %s920_s10 = smov 0   ;;  %s1062_s0 = inlined_call_operand.vmem [shape: bf16[2,9,512], index: 0, kind: input, shape index: {}]   ;;  %s1063_s1 = inlined_call_operand.vmem [shape: bf16[512,64], index: 1, kind: input, shape index: {}]   ;;  %s1064_s2 = inlined_call_operand.vmem [shape: bf16[2,9,64], index: 2, kind: output, shape index: {}]  }
   0x1   :  { %s922_s11 = smov 0  }
   0x2 LB: > { %s24_s12 = sadd.s32 1, %s896_s10  ;;  %p660_p0 = scmp.ge.s32.totalorder %s900_s11, 1  ;;  %s900_s11 = sphi %s922_s11, %s12_s11   ;;  %s896_s10 = sphi %s920_s10, %s1066_s10   ;;  %s892_s9 = sphi %s918_s9, %s1065_s9  }
   0x3   : > { %p26_p1 = scmp.ge.s32.totalorder %s24_s12, 2  ;;  %p132_p2 = scmp.lt.s32.totalorder %s900_s11, 3 }
   0x5   : > { %s1068_s12 = smov (%p26_p1, %s24_s12), 0  ;;  %p133_p3 = pnand %p660_p0, %p132_p2 }
   0x6   : > { %p160_p4 = scmp.lt.s32.totalorder (!%p133_p3), %s892_s9, 1 }
   0x7   : > { %136 = sbr.rel (%p133_p3) target bundleno = 250 (0xfa), region = 28 }
   0xc   : > { %v824_v0 = vld [vmem:[%s1063_s1 + $0x38] sm:$0xff]  ;;  %v823_v4 = vld [vmem:[%s1063_s1 + $0x30] sm:$0xff]  ;;  %v822_v8 = vld [vmem:[%s1063_s1 + $0x28] sm:$0xff]  ;;  %s1070_s9 = smov (!%p160_p4, %s892_s9), 1  ;;  %vm511_vm0 = vcmask 523264   ;;  %v902_v55 = vmov 9.0  }
   0xd   : > { %v832_v1 = vld [vmem:[%s1063_s1 + $0x78] sm:$0xff]  ;;  %455 = vmatpush.bf16.msra.mxu0 %v824_v0  ;;  %v831_v5 = vld [vmem:[%s1063_s1 + $0x70] sm:$0xff]  ;;  %v830_v9 = vld [vmem:[%s1063_s1 + $0x68] sm:$0xff]  ;;  %s811_s13 = sshll.u32 %s1070_s9, 5  ;;  %874 = vrcp.f32 %v902_v55  ;;  %vm513_vm1 = vcmask 516096   ;;  %s812_s5 = sshll.u32 %s1070_s9, 3 }
   0xe   : > { %v840_v2 = vld [vmem:[%s1063_s1 + $0xb8] sm:$0xff]  ;;  %469 = vmatpush.bf16.msra.mxu1 %v832_v1  ;;  %v839_v6 = vld [vmem:[%s1063_s1 + $0xb0] sm:$0xff]  ;;  %v838_v10 = vld [vmem:[%s1063_s1 + $0xa8] sm:$0xff]  ;;  %s168_s20 = scalar_lea.vmem %s1062_s0, %s811_s13  ;;  %s174_s8 = scalar_lea.vmem %s1064_s2, %s812_s5  ;;  %vm579_vm6 = vsmask.f32 256  ;;  %vm576_vm9 = vcmask 519168  }
   0xf   : > { %v848_v3 = vld [vmem:[%s1063_s1 + $0xf8] sm:$0xff]  ;;  %483 = vmatpush.bf16.msra.mxu2 %v840_v2  ;;  %v847_v7 = vld [vmem:[%s1063_s1 + $0xf0] sm:$0xff]  ;;  %v846_v11 = vld [vmem:[%s1063_s1 + $0xe8] sm:$0xff] }
  0x10   : > { %497 = vmatpush.bf16.msra.mxu3 %v848_v3  ;;  %v821_v12 = vld [vmem:[%s1063_s1 + $0x20] sm:$0xff]  ;;  %v820_v16 = vld [vmem:[%s1063_s1 + $0x18] sm:$0xff]  ;;  %v819_v20 = vld [vmem:[%s1063_s1 + $0x10] sm:$0xff] }
  0x11   : > { %456 = vmatpush.bf16.msra.mxu0 %v823_v4  ;;  %v829_v13 = vld [vmem:[%s1063_s1 + $0x60] sm:$0xff]  ;;  %v828_v17 = vld [vmem:[%s1063_s1 + $0x58] sm:$0xff]  ;;  %v827_v21 = vld [vmem:[%s1063_s1 + $0x50] sm:$0xff] }
  0x12   : > { %470 = vmatpush.bf16.msra.mxu1 %v831_v5  ;;  %v837_v14 = vld [vmem:[%s1063_s1 + $0xa0] sm:$0xff]  ;;  %v836_v18 = vld [vmem:[%s1063_s1 + $0x98] sm:$0xff]  ;;  %v835_v22 = vld [vmem:[%s1063_s1 + $0x90] sm:$0xff] }
  0x13   : > { %484 = vmatpush.bf16.msra.mxu2 %v839_v6  ;;  %v845_v15 = vld [vmem:[%s1063_s1 + $0xe0] sm:$0xff]  ;;  %v844_v19 = vld [vmem:[%s1063_s1 + $0xd8] sm:$0xff]  ;;  %v843_v23 = vld [vmem:[%s1063_s1 + $0xd0] sm:$0xff]  ;;  %v875_v59 = vpop.eup %874 }
  0x14   : > { %498 = vmatpush.bf16.msra.mxu3 %v847_v7  ;;  %v818_v24 = vld [vmem:[%s1063_s1 + $0x8] sm:$0xff]  ;;  %v817_v28 = vld [vmem:[%s1063_s1] sm:$0xff]  ;;  %v815_v33 = vld [vmem:[%s168_s20 + $0xc] sm:$0x10]  ;;  %v531_v61 = vmul.f32 9.0, %v875_v59  ;;  %vm535_vm2 = vweird.f32 %v875_v59 }
  0x15   : > { %457 = vmatpush.bf16.msra.mxu0 %v822_v8  ;;  %v826_v25 = vld [vmem:[%s1063_s1 + $0x48] sm:$0xff]  ;;  %v825_v29 = vld [vmem:[%s1063_s1 + $0x40] sm:$0xff]  ;;  %v669_v35 = vld [vmem:[%s168_s20 + $0x10] sm:$0x10] }
  0x16   : > { %471 = vmatpush.bf16.msra.mxu1 %v830_v9  ;;  %v834_v26 = vld [vmem:[%s1063_s1 + $0x88] sm:$0xff]  ;;  %v833_v30 = vld [vmem:[%s1063_s1 + $0x80] sm:$0xff]  ;;  %v816_v37 = vld [vmem:[%s168_s20 + $0x14] sm:$0x10]  ;;  %v532_v2 = vsub.f32 1.0, %v531_v61 }
  0x17   : > { %485 = vmatpush.bf16.msra.mxu2 %v838_v10  ;;  %v842_v27 = vld [vmem:[%s1063_s1 + $0xc8] sm:$0xff]  ;;  %v841_v31 = vld [vmem:[%s1063_s1 + $0xc0] sm:$0xff]  ;;  %v677_v39 = vld [vmem:[%s168_s20 + $0x18] sm:$0x10] }
  0x18   : > { %499 = vmatpush.bf16.msra.mxu3 %v846_v11  ;;  %v667_v32 = vld [vmem:[%s168_s20] sm:$0xf]  ;;  %v813_v34 = vld [vmem:[%s168_s20 + $0x4] sm:$0xf]  ;;  %v675_v36 = vld [vmem:[%s168_s20 + $0x8] sm:$0xf]  ;;  %v533_v9 = vmul.f32 %v875_v59, %v532_v2 }
  0x19   : > { %458 = vmatpush.bf16.msra.mxu0 %v821_v12  ;;  %v814_v38 = vld [vmem:[%s168_s20 + $0xc] sm:$0xf]  ;;  %v668_v40 = vor.u32 %v815_v33, %v667_v32  ;;  %v672_v41 = vor.u32 %v813_v34, %v669_v35  ;;  %v676_v42 = vor.u32 %v816_v37, %v675_v36  ;;  %vm580_vm10 = vmand %vm513_vm1, %vm579_vm6 }
  0x1a   : > { %472 = vmatpush.bf16.msra.mxu1 %v829_v13  ;;  %v680_v43 = vor.u32 %v814_v38, %v677_v39 }
  0x1b   : > { %486 = vmatpush.bf16.msra.mxu2 %v837_v14  ;;  %v534_v14 = vadd.f32 %v875_v59, %v533_v9 }
  0x1c   : > { %500 = vmatpush.bf16.msra.mxu3 %v845_v15 }
  0x1d   : > { %459 = vmatpush.bf16.msra.mxu0 %v820_v16 }
  0x1e   : > { %473 = vmatpush.bf16.msra.mxu1 %v828_v17 }
  0x1f   : > { %487 = vmatpush.bf16.msra.mxu2 %v836_v18 }
  0x20   : > { %501 = vmatpush.bf16.msra.mxu3 %v844_v19  ;;  %v536_v19 = vsel %vm535_vm2, %v875_v59, %v534_v14 }
  0x21   : > { %460 = vmatpush.bf16.msra.mxu0 %v819_v20 }
  0x22   : > { %474 = vmatpush.bf16.msra.mxu1 %v827_v21 }
  0x23   : > { %488 = vmatpush.bf16.msra.mxu2 %v835_v22 }
  0x24   : > { %502 = vmatpush.bf16.msra.mxu3 %v843_v23 }
  0x25   : > { %461 = vmatpush.bf16.msra.mxu0 %v818_v24 }
  0x26   : > { %475 = vmatpush.bf16.msra.mxu1 %v826_v25 }
  0x27   : > { %489 = vmatpush.bf16.msra.mxu2 %v834_v26 }
  0x28   : > { %503 = vmatpush.bf16.msra.mxu3 %v842_v27 }
  0x29   : > { %462 = vmatpush.bf16.msra.mxu0 %v817_v28 }
  0x2a   : > { %476 = vmatpush.bf16.msra.mxu1 %v825_v29 }
  0x2b   : > { %490 = vmatpush.bf16.msra.mxu2 %v833_v30 }
  0x2c   : > { %504 = vmatpush.bf16.msra.mxu3 %v841_v31  ;;  %463 = vmatmul.bf16.vlgmr.msra.gmra.mxu0 %v668_v40 }
  0x2d   : > { %477 = vmatmul.bf16.vlgmr.msra.gmra.mxu1 %v672_v41 }
  0x2e   : > { %491 = vmatmul.bf16.vlgmr.msra.gmra.mxu2 %v676_v42 }
  0x2f   : > { %505 = vmatmul.bf16.vlgmr.msra.gmra.mxu3 %v680_v43 }
  0xa9   : > { %v464_v44 = vpop.f32.mrf.mxu0 }
  0xaa   : > { %v478_v45 = vpop.f32.mrf.mxu1 }
  0xab   : > { %v479_v46 = vadd.f32 %v478_v45, %v464_v44  ;;  %v581_v44 = vld [vmem:[%s174_s8 + $0x4] sm:$0x1] }
  0xb1   : > { %v492_v47 = vpop.f32.mrf.mxu2  ;;  %v466_v51 = vpop.f32.mrf.mxu0 }
  0xb2   : > { %v506_v48 = vpop.f32.mrf.mxu3  ;;  %v493_v49 = vadd.f32 %v492_v47, %v479_v46  ;;  %v480_v52 = vpop.f32.mrf.mxu1 }
  0xb3   : > { %v481_v53 = vadd.f32 %v480_v52, %v466_v51 }
  0xb4   : > { %v507_v50 = vadd.f32 %v506_v48, %v493_v49 }
  0xb6   : > { %512 = vst.msk [vmem:[#allocation2] sm:$0xff] %vm511_vm0, %v507_v50 }
  0xb9   : > { %v494_v54 = vpop.f32.mrf.mxu2 }
  0xba   : > { %v495_v56 = vadd.f32 %v494_v54, %v481_v53  ;;  %v508_v57 = vpop.f32.mrf.mxu3 }
  0xbc   : > { %v509_v58 = vadd.f32 %v508_v57, %v495_v56 }
  0xbd   : > { %v519_v60 = vld [vmem:[#allocation2] sm:$0xff] }
  0xbe   : > { %514 = vst.msk [vmem:[#allocation2 + $0x8] sm:$0x1] %vm513_vm1, %v509_v58  ;;  %v538_v62 = vmul.f32 %v519_v60, %v519_v60  ;;  %v521_v0 = vsel %vm511_vm0, %v519_v60, 0.0 }
  0xc0   : > { %v540_v5 = vsel %vm511_vm0, %v538_v62, 0.0 }
  0xc5   : > { %v520_v63 = vld [vmem:[#allocation2 + $0x8] sm:$0x1] }
  0xc6   : > { %v522_v1 = vsel %vm513_vm1, %v520_v63, 0.0  ;;  %v539_v3 = vmul.f32 %v520_v63, %v520_v63 }
  0xc7   : > { %v523_v4 = vadd.f32 %v522_v1, %v521_v0 }
  0xc8   : > { %v541_v6 = vsel %vm513_vm1, %v539_v3, 0.0 }
  0xc9   : > { %v524_v7 = vrot.slane %v523_v4, 4  ;;  %v542_v8 = vadd.f32 %v541_v6, %v540_v5 }
  0xcb   : > { %v525_v10 = vadd.f32 %v524_v7, %v523_v4  ;;  %v543_v11 = vrot.slane %v542_v8, 4 }
  0xcd   : > { %v526_v12 = vrot.slane %v525_v10, 2  ;;  %v544_v13 = vadd.f32 %v543_v11, %v542_v8 }
  0xcf   : > { %v527_v15 = vadd.f32 %v526_v12, %v525_v10  ;;  %v545_v16 = vrot.slane %v544_v13, 2 }
  0xd1   : > { %v528_v17 = vrot.slane %v527_v15, 1  ;;  %v546_v18 = vadd.f32 %v545_v16, %v544_v13 }
  0xd3   : > { %v529_v20 = vadd.f32 %v528_v17, %v527_v15  ;;  %v547_v21 = vrot.slane %v546_v18, 1 }
  0xd5   : > { %v537_v22 = vmul.f32 %v536_v19, %v529_v20  ;;  %v548_v23 = vadd.f32 %v547_v21, %v546_v18 }
  0xd7   : > { %v549_v24 = vmul.f32 %v548_v23, %v536_v19  ;;  %v550_v25 = vmul.f32 %v537_v22, %v537_v22  ;;  %v553_v35 = vsub.f32 %v519_v60, %v537_v22  ;;  %v554_v36 = vsub.f32 %v520_v63, %v537_v22 }
  0xd9   : > { %v551_v26 = vsub.f32 %v549_v24, %v550_v25 }
  0xdb   : > { %v552_v27 = vmax.f32 %v551_v26, 0.0 }
  0xdd   : > { %v555_v28 = vadd.f32 1e-05, %v552_v27 }
  0xdf   : > { %876 = vrsqrt.f32 %v555_v28  ;;  %vm562_vm4 = vweird.f32 %v555_v28 }
  0xe5   : > { %v877_v29 = vpop.eup %876 }
  0xe6   : > { %v557_v30 = vmul.f32 %v877_v29, %v555_v28  ;;  %vm563_vm3 = vweird.f32 %v877_v29 }
  0xe7   : > { %vm564_vm5 = vmor %vm562_vm4, %vm563_vm3 }
  0xe8   : > { %v558_v31 = vmul.f32 %v877_v29, %v557_v30 }
  0xea   : > { %v559_v32 = vmul.f32 0.5, %v558_v31 }
  0xec   : > { %v560_v33 = vsub.f32 1.5, %v559_v32 }
  0xee   : > { %v561_v34 = vmul.f32 %v877_v29, %v560_v33 }
  0xf0   : > { %v565_v37 = vsel %vm564_vm5, %v877_v29, %v561_v34 }
  0xf1   : > { %v566_v38 = vmul.f32 %v565_v37, %v553_v35  ;;  %v567_v39 = vmul.f32 %v565_v37, %v554_v36 }
  0xf3   : > { %vm568_vm7 = vcmp.ge.f32.partialorder %v566_v38, 0.0  ;;  %vm569_vm8 = vcmp.ge.f32.partialorder %v567_v39, 0.0  ;;  %v570_v40 = vmul.f32 0.2, %v566_v38  ;;  %v571_v41 = vmul.f32 0.2, %v567_v39 }
  0xf5   : > { %v572_v42 = vsel %vm568_vm7, %v566_v38, %v570_v40  ;;  %v573_v43 = vsel %vm569_vm8, %v567_v39, %v571_v41 }
  0xf6   : > { %v574_v45 = vpack.c.bf16 %v572_v42, %v572_v42  ;;  %v575_v46 = vpack.c.bf16 %v573_v43, %v573_v43 }
  0xf8   : > { %577 = vst.msk [vmem:[%s174_s8] sm:$0xf] %vm576_vm9, %v574_v45  ;;  %v582_v47 = vsel %vm580_vm10, %v575_v46, %v581_v44 }
  0xf9   : > { %583 = vst [vmem:[%s174_s8 + $0x4] sm:$0x1] %v582_v47 }
  0xfa PF: > { %s12_s11 = sadd.s32 1, %s900_s11   ;;  %s1065_s9 = smov %s896_s10 }
  0xfb   : > { %p9_p5 = scmp.ge.s32.totalorder %s12_s11, 4   ;;  %s1066_s10 = smov %s1068_s12 }
  0xfd   :  { %11 = sbr.rel (!%p9_p5) target bundleno = 2 (0x2), region = 62 }

// kernel: _lambda_.9
= control target key start
LH: loop header
LB: loop body
LE: loop exit
PB: predicated region body
PF: predicated region fallthrough
CT: control target
= control target key end

     0   :  { %v986_v30 = vmov 0   ;;  %vm658_vm0 = vcmask 57344   ;;  %s1208_s1 = inlined_call_operand.vmem [shape: bf16[1024,8], index: 1, kind: input, shape index: {}]   ;;  %s1209_s0 = inlined_call_operand.vmem [shape: bf16[1,1024], index: 0, kind: input, shape index: {}]   ;;  %s1210_s2 = inlined_call_operand.<no memory space> [shape: f32[1,1], index: 2, kind: input, shape index: {}]   ;;  %s1211_s3 = inlined_call_operand.vmem [shape: f32[1,8], index: 3, kind: output, shape index: {}]  }
   0x1   :  { %v927_v0 = vld [vmem:[%s1208_s1 + $0x38] sm:$0xff]  ;;  %v926_v4 = vld [vmem:[%s1208_s1 + $0x30] sm:$0xff]  ;;  %v925_v8 = vld [vmem:[%s1208_s1 + $0x28] sm:$0xff]  ;;  %v8_v21 = vstv %s1210_s2  ;;  %985 = vset.pattern.permute.xlu0 %v986_v30 }
   0x2   :  { %v935_v1 = vld [vmem:[%s1208_s1 + $0x78] sm:$0xff]  ;;  %554 = vmatpush.bf16.msra.mxu0 %v927_v0  ;;  %v934_v5 = vld [vmem:[%s1208_s1 + $0x70] sm:$0xff]  ;;  %v933_v9 = vld [vmem:[%s1208_s1 + $0x68] sm:$0xff]  ;;  %9 = vst [vmem:[#allocation2] sm:$0x1] %v8_v21 }
   0x3   :  { %v943_v2 = vld [vmem:[%s1208_s1 + $0xb8] sm:$0xff]  ;;  %567 = vmatpush.bf16.msra.mxu1 %v935_v1  ;;  %v942_v6 = vld [vmem:[%s1208_s1 + $0xb0] sm:$0xff]  ;;  %v941_v10 = vld [vmem:[%s1208_s1 + $0xa8] sm:$0xff] }
   0x4   :  { %v951_v3 = vld [vmem:[%s1208_s1 + $0xf8] sm:$0xff]  ;;  %580 = vmatpush.bf16.msra.mxu2 %v943_v2  ;;  %v950_v7 = vld [vmem:[%s1208_s1 + $0xf0] sm:$0xff]  ;;  %v949_v11 = vld [vmem:[%s1208_s1 + $0xe8] sm:$0xff] }
   0x5   :  { %593 = vmatpush.bf16.msra.mxu3 %v951_v3  ;;  %v924_v12 = vld [vmem:[%s1208_s1 + $0x20] sm:$0xff]  ;;  %v923_v17 = vld [vmem:[%s1208_s1 + $0x18] sm:$0xff]  ;;  %v922_v22 = vld [vmem:[%s1208_s1 + $0x10] sm:$0xff] }
   0x6   :  { %555 = vmatpush.bf16.msra.mxu0 %v926_v4  ;;  %v932_v13 = vld [vmem:[%s1208_s1 + $0x60] sm:$0xff]  ;;  %v931_v18 = vld [vmem:[%s1208_s1 + $0x58] sm:$0xff]  ;;  %v930_v23 = vld [vmem:[%s1208_s1 + $0x50] sm:$0xff] }
   0x7   :  { %568 = vmatpush.bf16.msra.mxu1 %v934_v5  ;;  %v940_v14 = vld [vmem:[%s1208_s1 + $0xa0] sm:$0xff]  ;;  %v939_v19 = vld [vmem:[%s1208_s1 + $0x98] sm:$0xff]  ;;  %v938_v24 = vld [vmem:[%s1208_s1 + $0x90] sm:$0xff] }
   0x8   :  { %581 = vmatpush.bf16.msra.mxu2 %v942_v6  ;;  %v948_v15 = vld [vmem:[%s1208_s1 + $0xe0] sm:$0xff]  ;;  %v947_v20 = vld [vmem:[%s1208_s1 + $0xd8] sm:$0xff]  ;;  %v946_v25 = vld [vmem:[%s1208_s1 + $0xd0] sm:$0xff] }
   0x9   :  { %594 = vmatpush.bf16.msra.mxu3 %v950_v7  ;;  %v16_v16 = vld [vmem:[%s1209_s0] sm:$0xff]  ;;  %v921_v26 = vld [vmem:[%s1208_s1 + $0x8] sm:$0xff]  ;;  %v959_v36 = vld [vmem:[%s1208_s1 + $0x138] sm:$0xff] }
   0xa   :  { %556 = vmatpush.bf16.msra.mxu0 %v925_v8  ;;  %153 = vst [vmem:[#allocation1] ss:$9 sm:$0xff] %v16_v16  ;;  %v929_v27 = vld [vmem:[%s1208_s1 + $0x48] sm:$0xff]  ;;  %v920_v32 = vld [vmem:[%s1208_s1] sm:$0xff]  ;;  %v967_v37 = vld [vmem:[%s1208_s1 + $0x178] sm:$0xff] }
   0xb   :  { %569 = vmatpush.bf16.msra.mxu1 %v933_v9  ;;  %v937_v28 = vld [vmem:[%s1208_s1 + $0x88] sm:$0xff]  ;;  %v928_v33 = vld [vmem:[%s1208_s1 + $0x40] sm:$0xff]  ;;  %v975_v38 = vld [vmem:[%s1208_s1 + $0x1b8] sm:$0xff] }
   0xc   :  { %582 = vmatpush.bf16.msra.mxu2 %v941_v10  ;;  %v945_v29 = vld [vmem:[%s1208_s1 + $0xc8] sm:$0xff]  ;;  %v936_v34 = vld [vmem:[%s1208_s1 + $0x80] sm:$0xff]  ;;  %v983_v39 = vld [vmem:[%s1208_s1 + $0x1f8] sm:$0xff] }
   0xd   :  { %595 = vmatpush.bf16.msra.mxu3 %v949_v11  ;;  %v145_v31 = vld [vmem:[#allocation2] sm:$0x1]  ;;  %v944_v35 = vld [vmem:[%s1208_s1 + $0xc0] sm:$0xff]  ;;  %v958_v40 = vld [vmem:[%s1208_s1 + $0x130] sm:$0xff] }
   0xe   :  { %557 = vmatpush.bf16.msra.mxu0 %v924_v12  ;;  %148 = vperm.xlu0 %985, %v145_v31   ;;  %v966_v43 = vld [vmem:[%s1208_s1 + $0x170] sm:$0xff]  ;;  %v957_v48 = vld [vmem:[%s1208_s1 + $0x128] sm:$0xff]  ;;  %v956_v52 = vld [vmem:[%s1208_s1 + $0x120] sm:$0xff] }
   0xf   :  { %570 = vmatpush.bf16.msra.mxu1 %v932_v13  ;;  %v974_v46 = vld [vmem:[%s1208_s1 + $0x1b0] sm:$0xff]  ;;  %v965_v49 = vld [vmem:[%s1208_s1 + $0x168] sm:$0xff]  ;;  %v964_v53 = vld [vmem:[%s1208_s1 + $0x160] sm:$0xff] }
  0x10   :  { %583 = vmatpush.bf16.msra.mxu2 %v940_v14  ;;  %v982_v47 = vld [vmem:[%s1208_s1 + $0x1f0] sm:$0xff]  ;;  %v973_v50 = vld [vmem:[%s1208_s1 + $0x1a8] sm:$0xff]  ;;  %v972_v54 = vld [vmem:[%s1208_s1 + $0x1a0] sm:$0xff] }
  0x11   :  { %596 = vmatpush.bf16.msra.mxu3 %v948_v15  ;;  %v156_v41 = vld [vmem:[#allocation1 + $0x12] sm:$0xff]  ;;  %v157_v42 = vld [vmem:[#allocation1 + $0x1b] sm:$0xff]  ;;  %v155_v45 = vld [vmem:[#allocation1 + $0x9] sm:$0xff] }
  0x12   :  { %558 = vmatpush.bf16.msra.mxu0 %v923_v17  ;;  %v154_v44 = vld [vmem:[#allocation1] sm:$0xff]  ;;  %v981_v51 = vld [vmem:[%s1208_s1 + $0x1e8] sm:$0xff]  ;;  %v955_v56 = vld [vmem:[%s1208_s1 + $0x118] sm:$0xff] }
  0x13   :  { %571 = vmatpush.bf16.msra.mxu1 %v931_v18  ;;  %v980_v55 = vld [vmem:[%s1208_s1 + $0x1e0] sm:$0xff]  ;;  %v963_v57 = vld [vmem:[%s1208_s1 + $0x158] sm:$0xff]  ;;  %v954_v60 = vld [vmem:[%s1208_s1 + $0x110] sm:$0xff] }
  0x14   :  { %584 = vmatpush.bf16.msra.mxu2 %v939_v19  ;;  %v971_v58 = vld [vmem:[%s1208_s1 + $0x198] sm:$0xff]  ;;  %v962_v61 = vld [vmem:[%s1208_s1 + $0x150] sm:$0xff]  ;;  %v953_v0 = vld [vmem:[%s1208_s1 + $0x108] sm:$0xff] }
  0x15   :  { %597 = vmatpush.bf16.msra.mxu3 %v947_v20  ;;  %v979_v59 = vld [vmem:[%s1208_s1 + $0x1d8] sm:$0xff]  ;;  %v970_v62 = vld [vmem:[%s1208_s1 + $0x190] sm:$0xff]  ;;  %v961_v1 = vld [vmem:[%s1208_s1 + $0x148] sm:$0xff] }
  0x16   :  { %559 = vmatpush.bf16.msra.mxu0 %v922_v22  ;;  %v978_v63 = vld [vmem:[%s1208_s1 + $0x1d0] sm:$0xff]  ;;  %v969_v2 = vld [vmem:[%s1208_s1 + $0x188] sm:$0xff]  ;;  %v952_v4 = vld [vmem:[%s1208_s1 + $0x100] sm:$0xff] }
  0x17   :  { %572 = vmatpush.bf16.msra.mxu1 %v930_v23  ;;  %v977_v3 = vld [vmem:[%s1208_s1 + $0x1c8] sm:$0xff]  ;;  %v960_v5 = vld [vmem:[%s1208_s1 + $0x140] sm:$0xff]  ;;  %v160_v10 = vld [vmem:[#allocation1 + $0x36] sm:$0xff] }
  0x18   :  { %585 = vmatpush.bf16.msra.mxu2 %v938_v24  ;;  %v968_v6 = vld [vmem:[%s1208_s1 + $0x180] sm:$0xff]  ;;  %v159_v9 = vld [vmem:[#allocation1 + $0x2d] sm:$0xff] }
  0x19   :  { %598 = vmatpush.bf16.msra.mxu3 %v946_v25  ;;  %v976_v7 = vld [vmem:[%s1208_s1 + $0x1c0] sm:$0xff] }
  0x1a   :  { %560 = vmatpush.bf16.msra.mxu0 %v921_v26  ;;  %v158_v8 = vld [vmem:[#allocation1 + $0x24] sm:$0xff] }
  0x1b   :  { %573 = vmatpush.bf16.msra.mxu1 %v929_v27  ;;  %v161_v11 = vld [vmem:[#allocation1 + $0x3f] sm:$0xff] }
  0x1c   :  { %586 = vmatpush.bf16.msra.mxu2 %v937_v28 }
  0x1d   :  { %599 = vmatpush.bf16.msra.mxu3 %v945_v29 }
  0x1e   :  { %561 = vmatpush.bf16.msra.mxu0 %v920_v32 }
  0x1f   :  { %574 = vmatpush.bf16.msra.mxu1 %v928_v33 }
  0x20   :  { %587 = vmatpush.bf16.msra.mxu2 %v936_v34 }
  0x21   :  { %600 = vmatpush.bf16.msra.mxu3 %v944_v35  ;;  %562 = vmatmul.bf16.vlgmr.msra.gmra.mxu0 %v154_v44 }
  0x22   :  { %606 = vmatpush.bf16.msrb.mxu0 %v959_v36  ;;  %575 = vmatmul.bf16.vlgmr.msra.gmra.mxu1 %v155_v45 }
  0x23   :  { %619 = vmatpush.bf16.msrb.mxu1 %v967_v37  ;;  %588 = vmatmul.bf16.vlgmr.msra.gmra.mxu2 %v156_v41 }
  0x24   :  { %632 = vmatpush.bf16.msrb.mxu2 %v975_v38  ;;  %601 = vmatmul.bf16.vlgmr.msra.gmra.mxu3 %v157_v42 }
  0x25   :  { %645 = vmatpush.bf16.msrb.mxu3 %v983_v39 }
  0x26   :  { %607 = vmatpush.bf16.msrb.mxu0 %v958_v40 }
  0x27   :  { %620 = vmatpush.bf16.msrb.mxu1 %v966_v43 }
  0x28   :  { %633 = vmatpush.bf16.msrb.mxu2 %v974_v46 }
  0x29   :  { %646 = vmatpush.bf16.msrb.mxu3 %v982_v47 }
  0x2a   :  { %608 = vmatpush.bf16.msrb.mxu0 %v957_v48 }
  0x2b   :  { %621 = vmatpush.bf16.msrb.mxu1 %v965_v49 }
  0x2c   :  { %634 = vmatpush.bf16.msrb.mxu2 %v973_v50 }
  0x2d   :  { %647 = vmatpush.bf16.msrb.mxu3 %v981_v51 }
  0x2e   :  { %609 = vmatpush.bf16.msrb.mxu0 %v956_v52 }
  0x2f   :  { %622 = vmatpush.bf16.msrb.mxu1 %v964_v53 }
  0x30   :  { %635 = vmatpush.bf16.msrb.mxu2 %v972_v54 }
  0x31   :  { %648 = vmatpush.bf16.msrb.mxu3 %v980_v55 }
  0x32   :  { %610 = vmatpush.bf16.msrb.mxu0 %v955_v56 }
  0x33   :  { %623 = vmatpush.bf16.msrb.mxu1 %v963_v57 }
  0x34   :  { %636 = vmatpush.bf16.msrb.mxu2 %v971_v58 }
  0x35   :  { %649 = vmatpush.bf16.msrb.mxu3 %v979_v59 }
  0x36   :  { %611 = vmatpush.bf16.msrb.mxu0 %v954_v60 }
  0x37   :  { %624 = vmatpush.bf16.msrb.mxu1 %v962_v61 }
  0x38   :  { %637 = vmatpush.bf16.msrb.mxu2 %v970_v62 }
  0x39   :  { %650 = vmatpush.bf16.msrb.mxu3 %v978_v63 }
  0x3a   :  { %612 = vmatpush.bf16.msrb.mxu0 %v953_v0 }
  0x3b   :  { %625 = vmatpush.bf16.msrb.mxu1 %v961_v1 }
  0x3c   :  { %638 = vmatpush.bf16.msrb.mxu2 %v969_v2 }
  0x3d   :  { %651 = vmatpush.bf16.msrb.mxu3 %v977_v3 }
  0x3e   :  { %613 = vmatpush.bf16.msrb.mxu0 %v952_v4 }
  0x3f   :  { %626 = vmatpush.bf16.msrb.mxu1 %v960_v5 }
  0x40   :  { %639 = vmatpush.bf16.msrb.mxu2 %v968_v6 }
  0x41   :  { %652 = vmatpush.bf16.msrb.mxu3 %v976_v7  ;;  %614 = vmatmul.bf16.vlgmr.msrb.gmra.mxu0 %v158_v8 }
  0x42   :  { %627 = vmatmul.bf16.vlgmr.msrb.gmra.mxu1 %v159_v9 }
  0x43   :  { %640 = vmatmul.bf16.vlgmr.msrb.gmra.mxu2 %v160_v10 }
  0x44   :  { %653 = vmatmul.bf16.vlgmr.msrb.gmra.mxu3 %v161_v11 }
  0x80   :  { %v149_v18 = vpop.permute.xlu0 %148 }
  0x81   :  { %v151_v19 = vperm.slane %v149_v18, 0 }
  0x9e   :  { %v563_v12 = vpop.f32.mrf.mxu0 }
  0x9f   :  { %v576_v13 = vpop.f32.mrf.mxu1  ;;  %v564_v22 = vadd.f32 %v563_v12, %v151_v19 }
  0xa1   :  { %v577_v23 = vadd.f32 %v576_v13, %v564_v22 }
  0xa6   :  { %v589_v14 = vpop.f32.mrf.mxu2  ;;  %v565_v16 = vpop.f32.mrf.mxu0 }
  0xa7   :  { %v602_v15 = vpop.f32.mrf.mxu3  ;;  %v578_v17 = vpop.f32.mrf.mxu1  ;;  %v590_v24 = vadd.f32 %v589_v14, %v577_v23 }
  0xa9   :  { %v603_v25 = vadd.f32 %v602_v15, %v590_v24 }
  0xae   :  { %v591_v20 = vpop.f32.mrf.mxu2 }
  0xaf   :  { %v604_v21 = vpop.f32.mrf.mxu3 }
  0xbe   :  { %v615_v26 = vpop.f32.mrf.mxu0 }
  0xbf   :  { %v628_v27 = vpop.f32.mrf.mxu1  ;;  %v616_v28 = vadd.f32 %v615_v26, %v603_v25 }
  0xc1   :  { %v629_v29 = vadd.f32 %v628_v27, %v616_v28 }
  0xc6   :  { %v641_v30 = vpop.f32.mrf.mxu2  ;;  %v617_v33 = vpop.f32.mrf.mxu0 }
  0xc7   :  { %v654_v31 = vpop.f32.mrf.mxu3  ;;  %v642_v32 = vadd.f32 %v641_v30, %v629_v29  ;;  %v630_v34 = vpop.f32.mrf.mxu1 }
  0xc9   :  { %v655_v35 = vadd.f32 %v654_v31, %v642_v32 }
  0xcb   :  { %659 = vst.msk [vmem:[%s1211_s3] sm:$0x1] %vm658_vm0, %v655_v35 }
  0xce   :  { %v643_v36 = vpop.f32.mrf.mxu2 }
  0xcf   :  { %v656_v37 = vpop.f32.mrf.mxu3 }

</bundles_post_ra>
